<compile_context>
chip_gen: v5e
topology: v5e:2x2
jax: 0.10.0
libtpu: 0.0.40
codegen_flags: <defaults>
</compile_context>

<pallas_src>
from functools import partial

import jax
import jax.numpy as jnp
from jax import lax
from jax.experimental import pallas as pl
from jax.experimental.pallas import tpu as pltpu


# --------------------------------------------------------------------------
# Fused kernel: one grid step == Bt images, all activations [C, Bt*H*W].
# --------------------------------------------------------------------------
def _fused_kernel(x_ref, enc_w_ref, dec_w_ref, seg_w_ref, w1_ref, w2_ref,
                  seg_ref, cls_ref, *, H, W, Bt):
    f32 = jnp.float32
    HW = H * W
    N = Bt * HW                          # lanes handled this grid step
    cf = enc_w_ref.shape[0]              # 16 encoder/decoder features

    ones_row = jnp.ones((1, N), f32)

    # Per-lane image-local coordinates (lanes are image-major, then h*W + w).
    g = lax.broadcasted_iota(jnp.int32, (1, N), 1)
    s_id = g % HW                        # flattened (h, w) index within image
    w_id = g % W                         # column index within image

    # Precompute (lane shift, boundary mask) for the 9 taps, (dy, dx) row-major.
    # A tap's contribution comes from x[c, g + dy*W + dx]; masks zero the
    # positions whose source lies outside the image (zero "same" padding) --
    # this also kills any wrap across image boundaries from the cyclic roll.
    tap_specs = []
    for dy in (-1, 0, 1):
        for dx in (-1, 0, 1):
            conds = []
            if dy == -1:
                conds.append(s_id >= W)          # h >= 1
            if dy == +1:
                conds.append(s_id < HW - W)      # h <= H - 2
            if dx == -1:
                conds.append(w_id >= 1)          # w >= 1
            if dx == +1:
                conds.append(w_id < W - 1)       # w <= W - 2
            maskf = None
            if conds:
                m = conds[0]
                for c in conds[1:]:
                    m = m & c
                maskf = m.astype(f32)
            tap_specs.append(((-(dy * W + dx)) % N, maskf))

    def conv3x3(x, w_aug):
        """'same' 3x3 conv + bias as one deep-K MXU dot.

        x: [c_in, N] channels-major activations.
        w_aug: [c_out, 9*c_in + 1], tap-major columns with bias as last column.
        """
        parts = []
        for shift, maskf in tap_specs:
            t = x if shift == 0 else pltpu.roll(x, shift=shift, axis=1)
            if maskf is not None:
                t = t * maskf                    # zero the halo contributions
            parts.append(t)
        parts.append(ones_row)                   # bias row
        slab = jnp.concatenate(parts, axis=0)    # [9*c_in + 1, N]
        return jnp.dot(w_aug, slab, preferred_element_type=f32)

    # ---- encoder stand-in: 3x3 conv (cin -> cf) + ReLU ---------------------
    feat = jnp.maximum(conv3x3(x_ref[...], enc_w_ref[...]), 0.0)     # [cf, N]

    # ---- classification head on in-register features -----------------------
    # AdaptiveAvgPool2d(1) == per-image mean over H*W.  Channels-major math,
    # so the PyTorch Linear weights are used in their native (out, in) layout
    # and biases ride as ones rows appended to the activations.
    if Bt == 1:
        pooled = jnp.mean(feat, axis=1, keepdims=True)               # [cf, 1]
    else:
        n_i = lax.broadcasted_iota(jnp.int32, (N, Bt), 0)
        b_i = lax.broadcasted_iota(jnp.int32, (N, Bt), 1)
        in_img = (n_i >= b_i * HW) & (n_i < (b_i + 1) * HW)
        pool_mat = jnp.where(in_img, 1.0 / HW, 0.0).astype(f32)      # [N, Bt]
        pooled = jnp.dot(feat, pool_mat, preferred_element_type=f32)  # [cf, Bt]
    ones_col = jnp.ones((1, Bt), f32)
    pooled_aug = jnp.concatenate([pooled, ones_col], axis=0)         # [cf+1, Bt]
    h = jnp.maximum(jnp.dot(w1_ref[...], pooled_aug,
                            preferred_element_type=f32), 0.0)        # [64, Bt]
    # Dropout(0.2) is identity at inference time.
    h_aug = jnp.concatenate([h, ones_col], axis=0)                   # [65, Bt]
    logits = jnp.dot(w2_ref[...], h_aug, preferred_element_type=f32)  # [ncls, Bt]
    cls_ref[0] = logits.astype(cls_ref.dtype)

    # ---- decoder stand-in: 3x3 conv (cf -> cf) + ReLU -----------------------
    dec = jnp.maximum(conv3x3(feat, dec_w_ref[...]), 0.0)            # [cf, N]

    # ---- seg_final (1x1 conv cf -> 1, bias folded) + sigmoid ----------------
    dec_aug = jnp.concatenate([dec, ones_row], axis=0)               # [cf+1, N]
    seg_lin = jnp.dot(seg_w_ref[...], dec_aug,
                      preferred_element_type=f32)                    # [1, N]
    seg_ref[...] = jax.nn.sigmoid(seg_lin).astype(seg_ref.dtype)


def _fused_forward(x_cm, enc_w_aug, dec_w_aug, seg_w_aug, w1_aug, w2_aug,
                   *, B, H, W, Bt):
    cin = x_cm.shape[0]
    cf = enc_w_aug.shape[0]
    hid = w1_aug.shape[0]
    ncls = w2_aug.shape[0]
    HW = H * W
    n = Bt * HW
    nblk = B // Bt

    flops = (2 * B * HW * ((9 * cin + 1) * cf + (9 * cf + 1) * cf + (cf + 1))
             + B * (2 * HW * cf + 2 * (cf + 1) * hid + 2 * (hid + 1) * ncls))
    bytes_accessed = 4 * (x_cm.size + enc_w_aug.size + dec_w_aug.size
                          + seg_w_aug.size + w1_aug.size + w2_aug.size
                          + B * HW + B * ncls)
    cost = pl.CostEstimate(flops=flops, transcendentals=B * HW,
                           bytes_accessed=bytes_accessed)

    grid_spec = pltpu.PrefetchScalarGridSpec(
        num_scalar_prefetch=0,
        grid=(nblk,),
        in_specs=[
            pl.BlockSpec((cin, n), lambda i: (0, i)),        # activations, lane-blocked
            pl.BlockSpec(enc_w_aug.shape, lambda i: (0, 0)),  # enc 3x3 taps + bias col
            pl.BlockSpec(dec_w_aug.shape, lambda i: (0, 0)),  # dec 3x3 taps + bias col
            pl.BlockSpec(seg_w_aug.shape, lambda i: (0, 0)),  # seg 1x1 + bias
            pl.BlockSpec(w1_aug.shape, lambda i: (0, 0)),     # cls Linear1 (out,in)+bias
            pl.BlockSpec(w2_aug.shape, lambda i: (0, 0)),     # cls Linear2 (out,in)+bias
        ],
        out_specs=(
            pl.BlockSpec((1, n), lambda i: (0, i)),           # seg mask, lane-dense
            pl.BlockSpec((1, ncls, Bt), lambda i: (i, 0, 0)),  # cls logits (chan-major)
        ),
    )

    return pl.pallas_call(
        partial(_fused_kernel, H=H, W=W, Bt=Bt),
        out_shape=(jax.ShapeDtypeStruct((1, B * HW), jnp.float32),
                   jax.ShapeDtypeStruct((nblk, ncls, Bt), jnp.float32)),
        grid_spec=grid_spec,
        compiler_params=pltpu.CompilerParams(
            dimension_semantics=("parallel",),     # shards grid over 2 TCs on v7x
            vmem_limit_bytes=32 * 1024 * 1024,
        ),
        cost_estimate=cost,
    )(x_cm, enc_w_aug, dec_w_aug, seg_w_aug, w1_aug, w2_aug)


# --------------------------------------------------------------------------
# Parameters (deterministic synthetic init, PyTorch layouts) and full forward
# --------------------------------------------------------------------------
def init_params(key):
    ks = jax.random.split(key, 8)
    s = 0.1
    return {
        # encoder stand-in: 3x3 conv 3 -> 16, PyTorch (cout, cin, kh, kw)
        "enc_w": s * jax.random.normal(ks[0], (16, 3, 3, 3), jnp.float32),
        "enc_b": s * jax.random.normal(ks[1], (16,), jnp.float32),
        # decoder stand-in: 3x3 conv 16 -> 16
        "dec_w": s * jax.random.normal(ks[2], (16, 16, 3, 3), jnp.float32),
        "dec_b": s * jax.random.normal(ks[3], (16,), jnp.float32),
        # seg_final: Conv2d(16, 1, kernel_size=1)
        "seg_w": s * jax.random.normal(ks[4], (1, 16, 1, 1), jnp.float32),
        "seg_b": jnp.zeros((1,), jnp.float32),
        # classification head: Linear(16,64) -> ReLU -> Dropout(0.2) -> Linear(64,4)
        "cls_w1": s * jax.random.normal(ks[5], (64, 16), jnp.float32),
        "cls_b1": jnp.zeros((64,), jnp.float32),
        "cls_w2": s * jax.random.normal(ks[6], (4, 64), jnp.float32),
        "cls_b2": jnp.zeros((4,), jnp.float32),
    }


@jax.jit
def thyroid_forward(params, x_nchw):
    x = x_nchw.astype(jnp.float32)
    B, cin, H, W = x.shape
    cf = params["enc_b"].shape[0]
    ncls = params["cls_b2"].shape[0]
    HW = H * W

    # Channels-major, lane-flattened activations: [cin, B*H*W].
    x_cm = jnp.transpose(x.reshape(B, cin, HW), (1, 0, 2)).reshape(cin, B * HW)

    # PyTorch Conv2d weights are (cout, cin, kh, kw); reorder taps to
    # (kh, kw, cin)-major (matching the kernel's slab row order) and append
    # the bias as one extra contraction column.
    def conv_w_aug(w, b):
        cout = w.shape[0]
        w_flat = jnp.transpose(w, (0, 2, 3, 1)).reshape(cout, -1)
        return jnp.concatenate([w_flat, b[:, None]], axis=1).astype(jnp.float32)

    enc_w_aug = conv_w_aug(params["enc_w"], params["enc_b"])           # [16, 28]
    dec_w_aug = conv_w_aug(params["dec_w"], params["dec_b"])           # [16, 145]
    seg_w_aug = jnp.concatenate([params["seg_w"].reshape(1, cf),
                                 params["seg_b"].reshape(1, 1)], axis=1)  # [1, 17]
    # PyTorch Linear weights are (out, in): used as-is (channels-major math).
    w1_aug = jnp.concatenate([params["cls_w1"], params["cls_b1"][:, None]], axis=1)
    w2_aug = jnp.concatenate([params["cls_w2"], params["cls_b2"][:, None]], axis=1)

    # Images per grid step: amortise per-step overhead, keep >= 2 grid steps
    # when possible (megacore on v7x), and cap the lane width so in-kernel
    # intermediates stay comfortably inside VMEM across generations.
    if HW % 128 != 0:
        Bt = B        # single full-array block keeps BlockSpecs legal
        # TODO(synk): pad H*W to a lane multiple for odd image sizes.
    else:
        Bt = max(1, min(B // 2 if B >= 2 else 1, max(1, 2048 // HW)))
        while B % Bt != 0:
            Bt -= 1

    seg, cls = _fused_forward(x_cm, enc_w_aug, dec_w_aug, seg_w_aug,
                              w1_aug, w2_aug, B=B, H=H, W=W, Bt=Bt)

    seg_mask = seg.reshape(B, 1, H, W)                       # NCHW, free reshape
    cls_logits = jnp.transpose(cls, (0, 2, 1)).reshape(B, ncls)
    return seg_mask, cls_logits


# --------------------------------------------------------------------------
# Pure-JAX (XLA) reference with the same stand-in architecture, for checking.
# --------------------------------------------------------------------------
def _reference_forward(params, x_nchw):
    x = x_nchw.astype(jnp.float32)

    def conv3(inp, w, b):
        y = lax.conv_general_dilated(
            inp, w, window_strides=(1, 1), padding="SAME",
            dimension_numbers=("NCHW", "OIHW", "NCHW"))
        return jnp.maximum(y + b[None, :, None, None], 0.0)

    feat = conv3(x, params["enc_w"], params["enc_b"])
    pooled = feat.mean(axis=(2, 3))                                   # [B, 16]
    h = jnp.maximum(pooled @ params["cls_w1"].T + params["cls_b1"], 0.0)
    cls = h @ params["cls_w2"].T + params["cls_b2"]                   # [B, 4]
    dec = conv3(feat, params["dec_w"], params["dec_b"])
    seg_lin = jnp.einsum("bchw,oc->bohw", dec, params["seg_w"].reshape(1, 16))
    seg_lin = seg_lin + params["seg_b"][None, :, None, None]
    return jax.nn.sigmoid(seg_lin), cls


if __name__ == "__main__":
    key = jax.random.PRNGKey(0)
    pkey, xkey = jax.random.split(key)
    params = init_params(pkey)

    # Small, module-consistent input: batch=4, 3-channel 16x16 images (NCHW).
    # Batch 4 exercises both per-step image batching (Bt=2) and a 2-step grid.
    x = jax.random.normal(xkey, (4, 3, 16, 16), jnp.float32)

    seg_mask, cls_logits = thyroid_forward(params, x)
    jax.block_until_ready((seg_mask, cls_logits))

    assert seg_mask.shape == (4, 1, 16, 16)
    assert cls_logits.shape == (4, 4)
    assert bool(jnp.all((seg_mask >= 0.0) & (seg_mask <= 1.0)))
    assert bool(jnp.all(jnp.isfinite(cls_logits)))

    seg_want, cls_want = _reference_forward(params, x)
    assert bool(jnp.allclose(seg_mask, seg_want, rtol=2e-2, atol=2e-2))
    assert bool(jnp.allclose(cls_logits, cls_want, rtol=2e-2, atol=2e-2))

    print("KERNEL_OK")
</pallas_src>

<mosaic_0001>
module attributes {stable_mosaic.version = 11 : i64} {
  func.func @_fused_kernel(%arg0: i32, %arg1: memref<3x512xf32, #tpu.memory_space<vmem>>, %arg2: memref<16x28xf32, #tpu.memory_space<vmem>>, %arg3: memref<16x145xf32, #tpu.memory_space<vmem>>, %arg4: memref<1x17xf32, #tpu.memory_space<vmem>>, %arg5: memref<64x17xf32, #tpu.memory_space<vmem>>, %arg6: memref<4x65xf32, #tpu.memory_space<vmem>>, %arg7: memref<1x512xf32, #tpu.memory_space<vmem>>, %arg8: memref<1x4x2xf32, #tpu.memory_space<vmem>>) attributes {dimension_semantics = [#tpu.dimension_semantics<parallel>], iteration_bounds = array<i64: 2>, scalar_prefetch = 0 : i64, scratch_operands = 0 : i64, tpu.core_type = #tpu.core_type<tc>, window_params = [{transform_indices = @transform_0, window_bounds = array<i64: 3, 512>}, {pipeline_mode = #tpu.pipeline_mode<synchronous>, transform_indices = @transform_1, window_bounds = array<i64: 16, 28>}, {pipeline_mode = #tpu.pipeline_mode<synchronous>, transform_indices = @transform_2, window_bounds = array<i64: 16, 145>}, {pipeline_mode = #tpu.pipeline_mode<synchronous>, transform_indices = @transform_3, window_bounds = array<i64: 1, 17>}, {pipeline_mode = #tpu.pipeline_mode<synchronous>, transform_indices = @transform_4, window_bounds = array<i64: 64, 17>}, {pipeline_mode = #tpu.pipeline_mode<synchronous>, transform_indices = @transform_5, window_bounds = array<i64: 4, 65>}, {transform_indices = @transform_6, window_bounds = array<i64: 1, 512>}, {transform_indices = @transform_7, window_bounds = array<i64: 1, 4, 2>}]} {
    %cst = arith.constant 1.000000e+00 : f32
    %0 = vector.broadcast %cst : f32 to vector<1x512xf32>
    %1 = tpu.iota {dimensions = array<i32: 1>} : vector<1x512xi32>
    %c256_i32 = arith.constant 256 : i32
    %c0_i32 = arith.constant 0 : i32
    %2 = arith.cmpi eq, %c256_i32, %c0_i32 : i32
    %c1_i32 = arith.constant 1 : i32
    %3 = arith.select %2, %c1_i32, %c256_i32 : i32
    %4 = vector.broadcast %3 : i32 to vector<1x512xi32>
    %5 = arith.remsi %1, %4 : vector<1x512xi32>
    %c0_i32_0 = arith.constant 0 : i32
    %6 = vector.broadcast %c0_i32_0 : i32 to vector<1x512xi32>
    %7 = arith.cmpi ne, %5, %6 : vector<1x512xi32>
    %c0_i32_1 = arith.constant 0 : i32
    %8 = vector.broadcast %c0_i32_1 : i32 to vector<1x512xi32>
    %9 = arith.cmpi slt, %5, %8 : vector<1x512xi32>
    %c0_i32_2 = arith.constant 0 : i32
    %10 = arith.cmpi slt, %3, %c0_i32_2 : i32
    %11 = vector.broadcast %10 : i1 to vector<1x512xi1>
    %12 = vector.broadcast %11 : vector<1x512xi1> to vector<1x512xi1>
    %13 = arith.xori %9, %12 : vector<1x512xi1>
    %14 = arith.andi %13, %7 : vector<1x512xi1>
    %15 = vector.broadcast %3 : i32 to vector<1x512xi32>
    %16 = arith.addi %5, %15 : vector<1x512xi32>
    %17 = arith.select %14, %16, %5 : vector<1x512xi1>, vector<1x512xi32>
    %c16_i32 = arith.constant 16 : i32
    %c0_i32_3 = arith.constant 0 : i32
    %18 = arith.cmpi eq, %c16_i32, %c0_i32_3 : i32
    %c1_i32_4 = arith.constant 1 : i32
    %19 = arith.select %18, %c1_i32_4, %c16_i32 : i32
    %20 = vector.broadcast %19 : i32 to vector<1x512xi32>
    %21 = arith.remsi %1, %20 : vector<1x512xi32>
    %c0_i32_5 = arith.constant 0 : i32
    %22 = vector.broadcast %c0_i32_5 : i32 to vector<1x512xi32>
    %23 = arith.cmpi ne, %21, %22 : vector<1x512xi32>
    %c0_i32_6 = arith.constant 0 : i32
    %24 = vector.broadcast %c0_i32_6 : i32 to vector<1x512xi32>
    %25 = arith.cmpi slt, %21, %24 : vector<1x512xi32>
    %c0_i32_7 = arith.constant 0 : i32
    %26 = arith.cmpi slt, %19, %c0_i32_7 : i32
    %27 = vector.broadcast %26 : i1 to vector<1x512xi1>
    %28 = vector.broadcast %27 : vector<1x512xi1> to vector<1x512xi1>
    %29 = arith.xori %25, %28 : vector<1x512xi1>
    %30 = arith.andi %29, %23 : vector<1x512xi1>
    %31 = vector.broadcast %19 : i32 to vector<1x512xi32>
    %32 = arith.addi %21, %31 : vector<1x512xi32>
    %33 = arith.select %30, %32, %21 : vector<1x512xi1>, vector<1x512xi32>
    %c16_i32_8 = arith.constant 16 : i32
    %34 = vector.broadcast %c16_i32_8 : i32 to vector<1x512xi32>
    %35 = arith.cmpi sge, %17, %34 : vector<1x512xi32>
    %c1_i32_9 = arith.constant 1 : i32
    %36 = vector.broadcast %c1_i32_9 : i32 to vector<1x512xi32>
    %37 = arith.cmpi sge, %33, %36 : vector<1x512xi32>
    %38 = arith.andi %35, %37 : vector<1x512xi1>
    %39 = arith.extui %38 : vector<1x512xi1> to vector<1x512xi32>
    %40 = arith.sitofp %39 : vector<1x512xi32> to vector<1x512xf32>
    %c16_i32_10 = arith.constant 16 : i32
    %41 = vector.broadcast %c16_i32_10 : i32 to vector<1x512xi32>
    %42 = arith.cmpi sge, %17, %41 : vector<1x512xi32>
    %43 = arith.extui %42 : vector<1x512xi1> to vector<1x512xi32>
    %44 = arith.sitofp %43 : vector<1x512xi32> to vector<1x512xf32>
    %c16_i32_11 = arith.constant 16 : i32
    %45 = vector.broadcast %c16_i32_11 : i32 to vector<1x512xi32>
    %46 = arith.cmpi sge, %17, %45 : vector<1x512xi32>
    %c15_i32 = arith.constant 15 : i32
    %47 = vector.broadcast %c15_i32 : i32 to vector<1x512xi32>
    %48 = arith.cmpi slt, %33, %47 : vector<1x512xi32>
    %49 = arith.andi %46, %48 : vector<1x512xi1>
    %50 = arith.extui %49 : vector<1x512xi1> to vector<1x512xi32>
    %51 = arith.sitofp %50 : vector<1x512xi32> to vector<1x512xf32>
    %c1_i32_12 = arith.constant 1 : i32
    %52 = vector.broadcast %c1_i32_12 : i32 to vector<1x512xi32>
    %53 = arith.cmpi sge, %33, %52 : vector<1x512xi32>
    %54 = arith.extui %53 : vector<1x512xi1> to vector<1x512xi32>
    %55 = arith.sitofp %54 : vector<1x512xi32> to vector<1x512xf32>
    %c15_i32_13 = arith.constant 15 : i32
    %56 = vector.broadcast %c15_i32_13 : i32 to vector<1x512xi32>
    %57 = arith.cmpi slt, %33, %56 : vector<1x512xi32>
    %58 = arith.extui %57 : vector<1x512xi1> to vector<1x512xi32>
    %59 = arith.sitofp %58 : vector<1x512xi32> to vector<1x512xf32>
    %c240_i32 = arith.constant 240 : i32
    %60 = vector.broadcast %c240_i32 : i32 to vector<1x512xi32>
    %61 = arith.cmpi slt, %17, %60 : vector<1x512xi32>
    %c1_i32_14 = arith.constant 1 : i32
    %62 = vector.broadcast %c1_i32_14 : i32 to vector<1x512xi32>
    %63 = arith.cmpi sge, %33, %62 : vector<1x512xi32>
    %64 = arith.andi %61, %63 : vector<1x512xi1>
    %65 = arith.extui %64 : vector<1x512xi1> to vector<1x512xi32>
    %66 = arith.sitofp %65 : vector<1x512xi32> to vector<1x512xf32>
    %c240_i32_15 = arith.constant 240 : i32
    %67 = vector.broadcast %c240_i32_15 : i32 to vector<1x512xi32>
    %68 = arith.cmpi slt, %17, %67 : vector<1x512xi32>
    %69 = arith.extui %68 : vector<1x512xi1> to vector<1x512xi32>
    %70 = arith.sitofp %69 : vector<1x512xi32> to vector<1x512xf32>
    %c240_i32_16 = arith.constant 240 : i32
    %71 = vector.broadcast %c240_i32_16 : i32 to vector<1x512xi32>
    %72 = arith.cmpi slt, %17, %71 : vector<1x512xi32>
    %c15_i32_17 = arith.constant 15 : i32
    %73 = vector.broadcast %c15_i32_17 : i32 to vector<1x512xi32>
    %74 = arith.cmpi slt, %33, %73 : vector<1x512xi32>
    %75 = arith.andi %72, %74 : vector<1x512xi1>
    %76 = arith.extui %75 : vector<1x512xi1> to vector<1x512xi32>
    %77 = arith.sitofp %76 : vector<1x512xi32> to vector<1x512xf32>
    %c0 = arith.constant 0 : index
    %c0_18 = arith.constant 0 : index
    %78 = vector.load %arg1[%c0, %c0_18] : memref<3x512xf32, #tpu.memory_space<vmem>>, vector<3x512xf32>
    %c0_19 = arith.constant 0 : index
    %c0_20 = arith.constant 0 : index
    %79 = vector.load %arg2[%c0_19, %c0_20] : memref<16x28xf32, #tpu.memory_space<vmem>>, vector<16x28xf32>
    %c17_i32 = arith.constant 17 : i32
    %80 = tpu.dynamic_rotate %78 by %c17_i32 dim 1 : vector<3x512xf32>, i32 -> vector<3x512xf32>
    %81 = vector.broadcast %40 : vector<1x512xf32> to vector<3x512xf32>
    %82 = arith.mulf %80, %81 : vector<3x512xf32>
    %c16_i32_21 = arith.constant 16 : i32
    %83 = tpu.dynamic_rotate %78 by %c16_i32_21 dim 1 : vector<3x512xf32>, i32 -> vector<3x512xf32>
    %84 = vector.broadcast %44 : vector<1x512xf32> to vector<3x512xf32>
    %85 = arith.mulf %83, %84 : vector<3x512xf32>
    %c15_i32_22 = arith.constant 15 : i32
    %86 = tpu.dynamic_rotate %78 by %c15_i32_22 dim 1 : vector<3x512xf32>, i32 -> vector<3x512xf32>
    %87 = vector.broadcast %51 : vector<1x512xf32> to vector<3x512xf32>
    %88 = arith.mulf %86, %87 : vector<3x512xf32>
    %c1_i32_23 = arith.constant 1 : i32
    %89 = tpu.dynamic_rotate %78 by %c1_i32_23 dim 1 : vector<3x512xf32>, i32 -> vector<3x512xf32>
    %90 = vector.broadcast %55 : vector<1x512xf32> to vector<3x512xf32>
    %91 = arith.mulf %89, %90 : vector<3x512xf32>
    %c511_i32 = arith.constant 511 : i32
    %92 = tpu.dynamic_rotate %78 by %c511_i32 dim 1 : vector<3x512xf32>, i32 -> vector<3x512xf32>
    %93 = vector.broadcast %59 : vector<1x512xf32> to vector<3x512xf32>
    %94 = arith.mulf %92, %93 : vector<3x512xf32>
    %c497_i32 = arith.constant 497 : i32
    %95 = tpu.dynamic_rotate %78 by %c497_i32 dim 1 : vector<3x512xf32>, i32 -> vector<3x512xf32>
    %96 = vector.broadcast %66 : vector<1x512xf32> to vector<3x512xf32>
    %97 = arith.mulf %95, %96 : vector<3x512xf32>
    %c496_i32 = arith.constant 496 : i32
    %98 = tpu.dynamic_rotate %78 by %c496_i32 dim 1 : vector<3x512xf32>, i32 -> vector<3x512xf32>
    %99 = vector.broadcast %70 : vector<1x512xf32> to vector<3x512xf32>
    %100 = arith.mulf %98, %99 : vector<3x512xf32>
    %c495_i32 = arith.constant 495 : i32
    %101 = tpu.dynamic_rotate %78 by %c495_i32 dim 1 : vector<3x512xf32>, i32 -> vector<3x512xf32>
    %102 = vector.broadcast %77 : vector<1x512xf32> to vector<3x512xf32>
    %103 = arith.mulf %101, %102 : vector<3x512xf32>
    %104 = tpu.concatenate %82, %85, %88, %91, %78, %94, %97, %100, %103, %0 in 0 : vector<3x512xf32>, vector<3x512xf32>, vector<3x512xf32>, vector<3x512xf32>, vector<3x512xf32>, vector<3x512xf32>, vector<3x512xf32>, vector<3x512xf32>, vector<3x512xf32>, vector<1x512xf32> -> vector<28x512xf32>
    %cst_24 = arith.constant dense<0.000000e+00> : vector<16x512xf32>
    %105 = tpu.matmul %79, %104, %cst_24 {dimension_numbers = #tpu.dot_dimension_numbers<[1], [0], [0], [1], [0, 0, 1, 1], [], []>} : vector<16x28xf32>, vector<28x512xf32>, vector<16x512xf32> -> vector<16x512xf32>
    %cst_25 = arith.constant 0.000000e+00 : f32
    %106 = vector.broadcast %cst_25 : f32 to vector<16x512xf32>
    %107 = arith.maximumf %105, %106 : vector<16x512xf32>
    %108 = tpu.iota {dimensions = array<i32: 0>} : vector<512x2xi32>
    %109 = tpu.iota {dimensions = array<i32: 1>} : vector<512x2xi32>
    %c256_i32_26 = arith.constant 256 : i32
    %110 = vector.broadcast %c256_i32_26 : i32 to vector<512x2xi32>
    %111 = arith.muli %109, %110 : vector<512x2xi32>
    %112 = arith.cmpi sge, %108, %111 : vector<512x2xi32>
    %c1_i32_27 = arith.constant 1 : i32
    %113 = vector.broadcast %c1_i32_27 : i32 to vector<512x2xi32>
    %114 = arith.addi %109, %113 : vector<512x2xi32>
    %c256_i32_28 = arith.constant 256 : i32
    %115 = vector.broadcast %c256_i32_28 : i32 to vector<512x2xi32>
    %116 = arith.muli %114, %115 : vector<512x2xi32>
    %117 = arith.cmpi slt, %108, %116 : vector<512x2xi32>
    %118 = arith.andi %112, %117 : vector<512x2xi1>
    %cst_29 = arith.constant 3.906250e-03 : f32
    %cst_30 = arith.constant 0.000000e+00 : f32
    %119 = vector.broadcast %cst_29 : f32 to vector<512x2xf32>
    %120 = vector.broadcast %cst_30 : f32 to vector<512x2xf32>
    %121 = arith.select %118, %119, %120 : vector<512x2xi1>, vector<512x2xf32>
    %cst_31 = arith.constant dense<0.000000e+00> : vector<16x2xf32>
    %122 = tpu.matmul %107, %121, %cst_31 {dimension_numbers = #tpu.dot_dimension_numbers<[1], [0], [0], [1], [0, 0, 1, 1], [], []>} : vector<16x512xf32>, vector<512x2xf32>, vector<16x2xf32> -> vector<16x2xf32>
    %cst_32 = arith.constant 1.000000e+00 : f32
    %123 = vector.broadcast %cst_32 : f32 to vector<1x2xf32>
    %124 = tpu.concatenate %122, %123 in 0 : vector<16x2xf32>, vector<1x2xf32> -> vector<17x2xf32>
    %c0_33 = arith.constant 0 : index
    %c0_34 = arith.constant 0 : index
    %125 = vector.load %arg5[%c0_33, %c0_34] : memref<64x17xf32, #tpu.memory_space<vmem>>, vector<64x17xf32>
    %cst_35 = arith.constant dense<0.000000e+00> : vector<64x2xf32>
    %126 = tpu.matmul %125, %124, %cst_35 {dimension_numbers = #tpu.dot_dimension_numbers<[1], [0], [0], [1], [0, 0, 1, 1], [], []>} : vector<64x17xf32>, vector<17x2xf32>, vector<64x2xf32> -> vector<64x2xf32>
    %cst_36 = arith.constant 0.000000e+00 : f32
    %127 = vector.broadcast %cst_36 : f32 to vector<64x2xf32>
    %128 = arith.maximumf %126, %127 : vector<64x2xf32>
    %129 = tpu.concatenate %128, %123 in 0 : vector<64x2xf32>, vector<1x2xf32> -> vector<65x2xf32>
    %c0_37 = arith.constant 0 : index
    %c0_38 = arith.constant 0 : index
    %130 = vector.load %arg6[%c0_37, %c0_38] : memref<4x65xf32, #tpu.memory_space<vmem>>, vector<4x65xf32>
    %cst_39 = arith.constant dense<0.000000e+00> : vector<4x2xf32>
    %131 = tpu.matmul %130, %129, %cst_39 {dimension_numbers = #tpu.dot_dimension_numbers<[1], [0], [0], [1], [0, 0, 1, 1], [], []>} : vector<4x65xf32>, vector<65x2xf32>, vector<4x2xf32> -> vector<4x2xf32>
    %c0_40 = arith.constant 0 : index
    %c0_41 = arith.constant 0 : index
    %c0_42 = arith.constant 0 : index
    %132 = vector.load %arg8[%c0_40, %c0_41, %c0_42] : memref<1x4x2xf32, #tpu.memory_space<vmem>>, vector<1x4x2xf32>
    %133 = vector.shape_cast %132 : vector<1x4x2xf32> to vector<4x2xf32>
    %134 = vector.shape_cast %131 : vector<4x2xf32> to vector<1x4x2xf32>
    tpu.vector_store %arg8[%c0_40, %c0_41, %c0_42], %134 {strides = array<i32>} : memref<1x4x2xf32, #tpu.memory_space<vmem>>, vector<1x4x2xf32>,
    %c0_43 = arith.constant 0 : index
    %c0_44 = arith.constant 0 : index
    %135 = vector.load %arg3[%c0_43, %c0_44] : memref<16x145xf32, #tpu.memory_space<vmem>>, vector<16x145xf32>
    %c17_i32_45 = arith.constant 17 : i32
    %136 = tpu.dynamic_rotate %107 by %c17_i32_45 dim 1 : vector<16x512xf32>, i32 -> vector<16x512xf32>
    %137 = vector.broadcast %40 : vector<1x512xf32> to vector<16x512xf32>
    %138 = arith.mulf %136, %137 : vector<16x512xf32>
    %c16_i32_46 = arith.constant 16 : i32
    %139 = tpu.dynamic_rotate %107 by %c16_i32_46 dim 1 : vector<16x512xf32>, i32 -> vector<16x512xf32>
    %140 = vector.broadcast %44 : vector<1x512xf32> to vector<16x512xf32>
    %141 = arith.mulf %139, %140 : vector<16x512xf32>
    %c15_i32_47 = arith.constant 15 : i32
    %142 = tpu.dynamic_rotate %107 by %c15_i32_47 dim 1 : vector<16x512xf32>, i32 -> vector<16x512xf32>
    %143 = vector.broadcast %51 : vector<1x512xf32> to vector<16x512xf32>
    %144 = arith.mulf %142, %143 : vector<16x512xf32>
    %c1_i32_48 = arith.constant 1 : i32
    %145 = tpu.dynamic_rotate %107 by %c1_i32_48 dim 1 : vector<16x512xf32>, i32 -> vector<16x512xf32>
    %146 = vector.broadcast %55 : vector<1x512xf32> to vector<16x512xf32>
    %147 = arith.mulf %145, %146 : vector<16x512xf32>
    %c511_i32_49 = arith.constant 511 : i32
    %148 = tpu.dynamic_rotate %107 by %c511_i32_49 dim 1 : vector<16x512xf32>, i32 -> vector<16x512xf32>
    %149 = vector.broadcast %59 : vector<1x512xf32> to vector<16x512xf32>
    %150 = arith.mulf %148, %149 : vector<16x512xf32>
    %c497_i32_50 = arith.constant 497 : i32
    %151 = tpu.dynamic_rotate %107 by %c497_i32_50 dim 1 : vector<16x512xf32>, i32 -> vector<16x512xf32>
    %152 = vector.broadcast %66 : vector<1x512xf32> to vector<16x512xf32>
    %153 = arith.mulf %151, %152 : vector<16x512xf32>
    %c496_i32_51 = arith.constant 496 : i32
    %154 = tpu.dynamic_rotate %107 by %c496_i32_51 dim 1 : vector<16x512xf32>, i32 -> vector<16x512xf32>
    %155 = vector.broadcast %70 : vector<1x512xf32> to vector<16x512xf32>
    %156 = arith.mulf %154, %155 : vector<16x512xf32>
    %c495_i32_52 = arith.constant 495 : i32
    %157 = tpu.dynamic_rotate %107 by %c495_i32_52 dim 1 : vector<16x512xf32>, i32 -> vector<16x512xf32>
    %158 = vector.broadcast %77 : vector<1x512xf32> to vector<16x512xf32>
    %159 = arith.mulf %157, %158 : vector<16x512xf32>
    %160 = tpu.concatenate %138, %141, %144, %147, %107, %150, %153, %156, %159, %0 in 0 : vector<16x512xf32>, vector<16x512xf32>, vector<16x512xf32>, vector<16x512xf32>, vector<16x512xf32>, vector<16x512xf32>, vector<16x512xf32>, vector<16x512xf32>, vector<16x512xf32>, vector<1x512xf32> -> vector<145x512xf32>
    %cst_53 = arith.constant dense<0.000000e+00> : vector<16x512xf32>
    %161 = tpu.matmul %135, %160, %cst_53 {dimension_numbers = #tpu.dot_dimension_numbers<[1], [0], [0], [1], [0, 0, 1, 1], [], []>} : vector<16x145xf32>, vector<145x512xf32>, vector<16x512xf32> -> vector<16x512xf32>
    %cst_54 = arith.constant 0.000000e+00 : f32
    %162 = vector.broadcast %cst_54 : f32 to vector<16x512xf32>
    %163 = arith.maximumf %161, %162 : vector<16x512xf32>
    %164 = tpu.concatenate %163, %0 in 0 : vector<16x512xf32>, vector<1x512xf32> -> vector<17x512xf32>
    %c0_55 = arith.constant 0 : index
    %c0_56 = arith.constant 0 : index
    %165 = vector.load %arg4[%c0_55, %c0_56] : memref<1x17xf32, #tpu.memory_space<vmem>>, vector<1x17xf32>
    %cst_57 = arith.constant dense<0.000000e+00> : vector<1x512xf32>
    %166 = tpu.matmul %165, %164, %cst_57 {dimension_numbers = #tpu.dot_dimension_numbers<[1], [0], [0], [1], [0, 0, 1, 1], [], []>} : vector<1x17xf32>, vector<17x512xf32>, vector<1x512xf32> -> vector<1x512xf32>
    %167 = arith.negf %166 : vector<1x512xf32>
    %168 = math.exp %167 : vector<1x512xf32>
    %cst_58 = arith.constant 1.000000e+00 : f32
    %169 = vector.broadcast %cst_58 : f32 to vector<1x512xf32>
    %170 = arith.addf %169, %168 : vector<1x512xf32>
    %171 = arith.divf %169, %170 : vector<1x512xf32>
    %c0_59 = arith.constant 0 : index
    %c0_60 = arith.constant 0 : index
    %172 = vector.load %arg7[%c0_59, %c0_60] : memref<1x512xf32, #tpu.memory_space<vmem>>, vector<1x512xf32>
    tpu.vector_store %arg7[%c0_59, %c0_60], %171 {strides = array<i32>} : memref<1x512xf32, #tpu.memory_space<vmem>>, vector<1x512xf32>,
    return
  }
  func.func @transform_0(%arg0: i32) -> (i32, i32) {
    %c0_i32 = arith.constant 0 : i32
    %c0_i32_0 = arith.constant 0 : i32
    return %c0_i32, %arg0 : i32, i32
  }
  func.func @transform_1(%arg0: i32) -> (i32, i32) {
    %c0_i32 = arith.constant 0 : i32
    %c0_i32_0 = arith.constant 0 : i32
    %c0_i32_1 = arith.constant 0 : i32
    return %c0_i32, %c0_i32_0 : i32, i32
  }
  func.func @transform_2(%arg0: i32) -> (i32, i32) {
    %c0_i32 = arith.constant 0 : i32
    %c0_i32_0 = arith.constant 0 : i32
    %c0_i32_1 = arith.constant 0 : i32
    return %c0_i32, %c0_i32_0 : i32, i32
  }
  func.func @transform_3(%arg0: i32) -> (i32, i32) {
    %c0_i32 = arith.constant 0 : i32
    %c0_i32_0 = arith.constant 0 : i32
    %c0_i32_1 = arith.constant 0 : i32
    return %c0_i32, %c0_i32_0 : i32, i32
  }
  func.func @transform_4(%arg0: i32) -> (i32, i32) {
    %c0_i32 = arith.constant 0 : i32
    %c0_i32_0 = arith.constant 0 : i32
    %c0_i32_1 = arith.constant 0 : i32
    return %c0_i32, %c0_i32_0 : i32, i32
  }
  func.func @transform_5(%arg0: i32) -> (i32, i32) {
    %c0_i32 = arith.constant 0 : i32
    %c0_i32_0 = arith.constant 0 : i32
    %c0_i32_1 = arith.constant 0 : i32
    return %c0_i32, %c0_i32_0 : i32, i32
  }
  func.func @transform_6(%arg0: i32) -> (i32, i32) {
    %c0_i32 = arith.constant 0 : i32
    %c0_i32_0 = arith.constant 0 : i32
    return %c0_i32, %arg0 : i32, i32
  }
  func.func @transform_7(%arg0: i32) -> (i32, i32, i32) {
    %c0_i32 = arith.constant 0 : i32
    %c0_i32_0 = arith.constant 0 : i32
    %c0_i32_1 = arith.constant 0 : i32
    return %arg0, %c0_i32, %c0_i32_0 : i32, i32, i32
  }
}

</mosaic_0001>

<bundles_post_ra>
// kernel: thyroid_forward.1
= control target key start
LH: loop header
LB: loop body
LE: loop exit
PB: predicated region body
PF: predicated region fallthrough
CT: control target
= control target key end

     0   :  { %s2451_s24 = smov 0   ;;  %s4148_s0 = inlined_call_operand.vmem [shape: f32[3,1024], index: 0, kind: input, shape index: {}]   ;;  %s4149_s1 = inlined_call_operand.vmem [shape: f32[16,28], index: 1, kind: input, shape index: {}]   ;;  %s4150_s2 = inlined_call_operand.vmem [shape: f32[16,145], index: 2, kind: input, shape index: {}]   ;;  %s4151_s3 = inlined_call_operand.vmem [shape: f32[1,17], index: 3, kind: input, shape index: {}]   ;;  %s4152_s4 = inlined_call_operand.vmem [shape: f32[64,17], index: 4, kind: input, shape index: {}]   ;;  %s4153_s5 = inlined_call_operand.vmem [shape: f32[4,65], index: 5, kind: input, shape index: {}]   ;;  %s4154_s6 = inlined_call_operand.vmem [shape: f32[1,1024], index: 6, kind: output, shape index: {0}]   ;;  %s4155_s7 = inlined_call_operand.vmem [shape: f32[2,4,2], index: 7, kind: output, shape index: {1}]  }
   0x1 LB: > { %s2457_s25 = sadd.s32 4294967295, %s2398_s24   ;;  %p2208_p0 = scmp.ge.s32.totalorder %s2398_s24, 1  ;;  %s2398_s24 = sphi %s2451_s24, %s18_s24  }
   0x2   : > { %p241_p1 = scmp.lt.s32.totalorder %s2398_s24, 3 }
   0x4   : > { %p242_p2 = pnand %p2208_p0, %p241_p1 }
   0x6   : > { %245 = sbr.rel (%p242_p2) target bundleno = 1039 (0x40f), region = 44 }
   0xb   : > { %s2209_s26 = sshll.u32 %s2457_s25, 2  ;;  %s2400_s8 = smov 17   ;;  %v4166_v36 = vlaneseq  ;;  %v2408_v50 = vmov 0.0   ;;  %vm4156_vm9 = vcmask 1045504   ;;  %vm4165_vm11 = vcmask 1042432  }
   0xc   : > { %p277_p3 = scmp.lt.s32.totalorder %s2209_s26, 7  ;;  %s2401_s9 = smov 16  }
   0xd   : > { %s2402_s10 = smov 15   ;;  %s2403_s11 = smov 1   ;;  %v2533_v37 = vand.u32 127, %v4166_v36 }
   0xe   : > { %s4390_s26 = smov (!%p277_p3, %s2209_s26), 7  ;;  %s2404_s12 = smov 127  }
   0xf   : > { %s2210_s27 = sshll.u32 %s4390_s26, 2  ;;  %s2405_s13 = smov 113   ;;  %v294_v38 = vadd.s32 256, %v2533_v37  ;;  %vm4157_vm1 = vcmp.lt.s32.totalorder %v2533_v37, 15  ;;  %v2558_v49 = vadd.s32 384, %v2533_v37  ;;  %vm4158_vm6 = vcmp.lt.s32.totalorder %v2533_v37, 17 }
  0x10   : > { %s280_s30 = scalar_lea.vmem %s4148_s0, %s2210_s27  ;;  %s2406_s14 = smov 112   ;;  %vm4159_vm7 = vcmp.lt.s32.totalorder %v2533_v37, 16  ;;  %vm4163_vm12 = vcmp.lt.s32.totalorder %v2533_v37, 1 }
  0x11   : > { %v2468_v0 = vld [vmem:[%s280_s30 + $0x8] sm:$0x77]  ;;  %v2470_v1 = vld [vmem:[%s280_s30] sm:$0x77]  ;;  %s2407_s15 = smov 111   ;;  %v314_v40 = vand.u32 255, %v294_v38 }
  0x12   : > { %496 = vst [vmem:[#allocation1 + $0x10] ss:$2 sm:$0xff] %v2468_v0  ;;  %v362_v41 = vand.u32 15, %v294_v38  ;;  %v369_v55 = vand.u32 15, %v2558_v49  ;;  %v321_v45 = vand.u32 255, %v2558_v49  ;;  %v2897_v38 = vmul.u32 256, %v2533_v37 }
  0x13   : > { %494 = vst [vmem:[#allocation1] ss:$2 sm:$0xff] %v2470_v1  ;;  %vm2543_vm2 = vcmp.ge.s32.totalorder %v314_v40, 16  ;;  %p287_p4 = scmp.lt.s32.totalorder %s2457_s25, 1 }
  0x14   : > { %vm2538_vm0 = vcmp.lt.s32.totalorder %v362_v41, 15  ;;  %vm2553_vm4 = vcmp.ge.s32.totalorder %v362_v41, 1  ;;  %v2572_v53 = vsel %vm2543_vm2, 1.0, %v2408_v50  ;;  %vm2599_vm8 = vcmp.lt.s32.totalorder %v369_v55, 15 }
  0x15   : > { %vm426_vm3 = vmand %vm2543_vm2, %vm2538_vm0  ;;  %4202 = vst [vmem:[#allocation3_spill] sm:$0xff] %v2572_v53  ;;  %vm2603_vm10 = vcmp.ge.s32.totalorder %v369_v55, 1  ;;  %v2704_v55 = vsel %vm2538_vm0, 1.0, %v2408_v50  ;;  %vm4160_vm0 = vcmp.lt.s32.totalorder %v2533_v37, 127  ;;  %s4392_s25 = smov (!%p287_p4, %s2457_s25), 1 }
  0x16   : > { %v2561_v51 = vsel %vm426_vm3, 1.0, %v2408_v50  ;;  %vm402_vm5 = vmand %vm2543_vm2, %vm2553_vm4 }
  0x17   : > { %4201 = vst [vmem:[#allocation2_spill] sm:$0xff] %v2561_v51  ;;  %v2583_v58 = vsel %vm402_vm5, 1.0, %v2408_v50 }
  0x18   : > { %4203 = vst [vmem:[#allocation4_spill] sm:$0xff] %v2583_v58 }
  0x19   : > { %v500_v2 = vld.sshfl [vmem:[#allocation1 + $0x18] sm:$0xff pattern:$0x75316420]  ;;  %v499_v3 = vld.sshfl [vmem:[#allocation1 + $0x10] sm:$0xff pattern:$0x75316420] }
  0x1a   : > { %511 = vrot.lane.b32.xlu1 %v500_v2, %s2400_s8  ;;  %509 = vrot.lane.b32.xlu0 %v499_v3, %s2400_s8  ;;  %524 = vst [vmem:[#allocation1 + $0x10] ss:$2 sm:$0xff] %v2468_v0  ;;  %v2477_v4 = vld.sshfl [vmem:[#allocation1] sm:$0xff pattern:$0x75316420] }
  0x1b   : > { %v498_v5 = vld.sshfl [vmem:[#allocation1 + $0x8] sm:$0xff pattern:$0x75316420] }
  0x1c   : > { %522 = vst [vmem:[#allocation1] ss:$2 sm:$0xff] %v2470_v1  ;;  %507 = vrot.lane.b32.xlu2 %v498_v5, %s2400_s8 }
  0x21   : > { %v527_v6 = vld.sshfl [vmem:[#allocation1 + $0x10] sm:$0xff pattern:$0x75316420]  ;;  %v528_v7 = vld.sshfl [vmem:[#allocation1 + $0x18] sm:$0xff pattern:$0x75316420] }
  0x22   : > { %537 = vrot.lane.b32.xlu1 %v527_v6, %s2401_s9  ;;  %552 = vst [vmem:[#allocation1 + $0x10] ss:$2 sm:$0xff] %v2468_v0  ;;  %v2614_v6 = vsel %vm2599_vm8, 1.0, %v2408_v50 }
  0x23   : > { %v526_v8 = vld.sshfl [vmem:[#allocation1 + $0x8] sm:$0xff pattern:$0x75316420]  ;;  %v2483_v9 = vld.sshfl [vmem:[#allocation1] sm:$0xff pattern:$0x75316420] }
  0x24   : > { %535 = vrot.lane.b32.xlu0 %v526_v8, %s2401_s9  ;;  %550 = vst [vmem:[#allocation1] ss:$2 sm:$0xff] %v2470_v1  ;;  %539 = vrot.lane.b32.xlu2 %v528_v7, %s2401_s9  ;;  %v2624_v8 = vsel %vm2603_vm10, 1.0, %v2408_v50 }
  0x25   : > { %4208 = vst [vmem:[#allocation5_spill] sm:$0xff] %v2624_v8 }
  0x29   : > { %v555_v10 = vld.sshfl [vmem:[#allocation1 + $0x10] sm:$0xff pattern:$0x75316420]  ;;  %v556_v11 = vld.sshfl [vmem:[#allocation1 + $0x18] sm:$0xff pattern:$0x75316420] }
  0x2a   : > { %580 = vst [vmem:[#allocation1 + $0x10] ss:$2 sm:$0xff] %v2468_v0 }
  0x2b   : > { %v553_v12 = vld.sshfl [vmem:[#allocation1] sm:$0xff pattern:$0x75316420]  ;;  %v554_v13 = vld.sshfl [vmem:[#allocation1 + $0x8] sm:$0xff pattern:$0x75316420] }
  0x2c   : > { %578 = vst [vmem:[#allocation1] ss:$2 sm:$0xff] %v2470_v1  ;;  %567 = vrot.lane.b32.xlu0 %v556_v11, %s2402_s10  ;;  %563 = vrot.lane.b32.xlu2 %v554_v13, %s2402_s10 }
  0x31   : > { %v583_v14 = vld.sshfl [vmem:[#allocation1 + $0x10] sm:$0xff pattern:$0x75316420]  ;;  %v584_v15 = vld.sshfl [vmem:[#allocation1 + $0x18] sm:$0xff pattern:$0x75316420] }
  0x32   : > { %593 = vrot.lane.b32.xlu1 %v583_v14, %s2403_s11  ;;  %608 = vst [vmem:[#allocation1 + $0x10] ss:$2 sm:$0xff] %v2468_v0 }
  0x33   : > { %v582_v16 = vld.sshfl [vmem:[#allocation1 + $0x8] sm:$0xff pattern:$0x75316420]  ;;  %v581_v17 = vld.sshfl [vmem:[#allocation1] sm:$0xff pattern:$0x75316420] }
  0x34   : > { %591 = vrot.lane.b32.xlu0 %v582_v16, %s2403_s11  ;;  %606 = vst [vmem:[#allocation1] ss:$2 sm:$0xff] %v2470_v1  ;;  %565 = vrot.lane.b32.xlu2 %v555_v10, %s2402_s10 }
  0x39   : > { %v611_v18 = vld.sshfl [vmem:[#allocation1 + $0x10] sm:$0xff pattern:$0x75316420]  ;;  %v612_v19 = vld.sshfl [vmem:[#allocation1 + $0x18] sm:$0xff pattern:$0x75316420] }
  0x3a   : > { %595 = vrot.lane.b32.xlu1 %v584_v15, %s2403_s11  ;;  %636 = vst [vmem:[#allocation1 + $0x10] ss:$2 sm:$0xff] %v2468_v0 }
  0x3b   : > { %v609_v20 = vld.sshfl [vmem:[#allocation1] sm:$0xff pattern:$0x75316420]  ;;  %v610_v21 = vld.sshfl [vmem:[#allocation1 + $0x8] sm:$0xff pattern:$0x75316420] }
  0x3c   : > { %621 = vrot.lane.b32.xlu0 %v611_v18, %s2404_s12  ;;  %561 = vrot.lane.b32.xlu2 %v553_v12, %s2402_s10  ;;  %634 = vst [vmem:[#allocation1] ss:$2 sm:$0xff] %v2470_v1 }
  0x41   : > { %v639_v22 = vld.sshfl [vmem:[#allocation1 + $0x10] sm:$0xff pattern:$0x75316420]  ;;  %v640_v23 = vld.sshfl [vmem:[#allocation1 + $0x18] sm:$0xff pattern:$0x75316420] }
  0x42   : > { %617 = vrot.lane.b32.xlu1 %v609_v20, %s2404_s12  ;;  %664 = vst [vmem:[#allocation1 + $0x10] ss:$2 sm:$0xff] %v2468_v0 }
  0x43   : > { %v637_v24 = vld.sshfl [vmem:[#allocation1] sm:$0xff pattern:$0x75316420]  ;;  %v638_v25 = vld.sshfl [vmem:[#allocation1 + $0x8] sm:$0xff pattern:$0x75316420] }
  0x44   : > { %623 = vrot.lane.b32.xlu0 %v612_v19, %s2404_s12  ;;  %645 = vrot.lane.b32.xlu2 %v637_v24, %s2405_s13  ;;  %662 = vst [vmem:[#allocation1] ss:$2 sm:$0xff] %v2470_v1 }
  0x49   : > { %v667_v26 = vld.sshfl [vmem:[#allocation1 + $0x10] sm:$0xff pattern:$0x75316420]  ;;  %v668_v27 = vld.sshfl [vmem:[#allocation1 + $0x18] sm:$0xff pattern:$0x75316420] }
  0x4a   : > { %649 = vrot.lane.b32.xlu1 %v639_v22, %s2405_s13  ;;  %692 = vst [vmem:[#allocation1 + $0x10] ss:$2 sm:$0xff] %v2468_v0 }
  0x4b   : > { %v665_v28 = vld.sshfl [vmem:[#allocation1] sm:$0xff pattern:$0x75316420]  ;;  %v666_v29 = vld.sshfl [vmem:[#allocation1 + $0x8] sm:$0xff pattern:$0x75316420] }
  0x4c   : > { %619 = vrot.lane.b32.xlu0 %v610_v21, %s2404_s12  ;;  %673 = vrot.lane.b32.xlu2 %v665_v28, %s2406_s14  ;;  %690 = vst [vmem:[#allocation1] ss:$2 sm:$0xff] %v2470_v1 }
  0x51   : > { %v696_v30 = vld.sshfl [vmem:[#allocation1 + $0x18] sm:$0xff pattern:$0x75316420]  ;;  %v695_v31 = vld.sshfl [vmem:[#allocation1 + $0x10] sm:$0xff pattern:$0x75316420] }
  0x52   : > { %651 = vrot.lane.b32.xlu1 %v640_v23, %s2405_s13  ;;  %757 = vst [vmem:[#allocation1 + $0x11] ss:$2 sm:$0xff] %v2468_v0 }
  0x53   : > { %v693_v32 = vld.sshfl [vmem:[#allocation1] sm:$0xff pattern:$0x75316420]  ;;  %v694_v33 = vld.sshfl [vmem:[#allocation1 + $0x8] sm:$0xff pattern:$0x75316420] }
  0x54   : > { %677 = vrot.lane.b32.xlu0 %v667_v26, %s2406_s14  ;;  %705 = vrot.lane.b32.xlu2 %v695_v31, %s2407_s15  ;;  %755 = vst [vmem:[#allocation1 + $0x1] ss:$2 sm:$0xff] %v2470_v1  ;;  %v300_v31 = vand.u32 255, %v2533_v37 }
  0x56   : > { %vm2682_vm2 = vcmp.ge.s32.totalorder %v300_v31, 16 }
  0x5a   : > { %647 = vrot.lane.b32.xlu1 %v638_v25, %s2405_s13  ;;  %v293_v25 = vadd.s32 128, %v2533_v37 }
  0x5c   : > { %707 = vrot.lane.b32.xlu0 %v696_v30, %s2407_s15  ;;  %701 = vrot.lane.b32.xlu2 %v693_v32, %s2407_s15  ;;  %v307_v28 = vand.u32 255, %v293_v25  ;;  %v348_v32 = vand.u32 15, %v2533_v37 }
  0x5e   : > { %vm2666_vm14 = vcmp.lt.s32.totalorder %v307_v28, 240  ;;  %vm2686_vm3 = vcmp.lt.s32.totalorder %v348_v32, 15 }
  0x5f   : > { %vm424_vm5 = vmand %vm2682_vm2, %vm2686_vm3 }
  0x62   : > { %679 = vrot.lane.b32.xlu1 %v668_v27, %s2406_s14  ;;  %v355_v27 = vand.u32 15, %v293_v25 }
  0x64   : > { %589 = vrot.lane.b32.xlu0 %v581_v17, %s2403_s11  ;;  %703 = vrot.lane.b32.xlu2 %v694_v33, %s2407_s15  ;;  %vm2662_vm13 = vcmp.lt.s32.totalorder %v355_v27, 15 }
  0x65   : > { %vm477_vm15 = vmand %vm2666_vm14, %vm2662_vm13 }
  0x6a   : > { %675 = vrot.lane.b32.xlu1 %v666_v29, %s2406_s14 }
  0x6c   : > { %533 = vrot.lane.b32.xlu0 %v2483_v9, %s2401_s9 }
  0x72   : > { %505 = vrot.lane.b32.xlu1 %v2477_v4, %s2400_s8 }
  0x76   : > { %v2528_v34 = vpop.permute.xlu2 %507 }
  0x7e   : > { %v2530_v35 = vpop.permute.xlu2 %539 }
  0x86   : > { %v564_v39 = vpop.permute.xlu2 %563 }
  0x8c   : > { %v2536_v42 = vpop.permute.xlu1 %511  ;;  %v510_v43 = vpop.permute.xlu0 %509 }
  0x8d   : > { %v515_v59 = vsel %vm4158_vm6, %v2528_v34, %v510_v43  ;;  %v514_v9 = vsel %vm4158_vm6, %v510_v43, %v2536_v42 }
  0x8e   : > { %v566_v46 = vpop.permute.xlu2 %565  ;;  %v520_v0 = vmul.f32 %v2583_v58, %v515_v59  ;;  %v521_v15 = vmul.f32 %v2624_v8, %v514_v9  ;;  %v2734_v9 = vsel %vm424_vm5, 1.0, %v2408_v50  ;;  %vm4162_vm5 = vcmp.lt.s32.totalorder %v2533_v37, 113 }
  0x8f   : > { %v571_v47 = vsel %vm4157_vm1, %v564_v39, %v566_v46 }
  0x90   : > { %v2575_v54 = vmul.f32 %v2561_v51, %v571_v47 }
  0x92   : > { %v736_v63 = vrot.slane %v2575_v54, 2 }
  0x94   : > { %v538_v52 = vpop.permute.xlu1 %537 }
  0x95   : > { %v542_v4 = vsel %vm4159_vm7, %v538_v52, %v2530_v35 }
  0x96   : > { %v2578_v56 = vpop.permute.xlu0 %535  ;;  %v2580_v57 = vpop.permute.xlu2 %561  ;;  %v725_v12 = vrot.slane %v542_v4, 5 }
  0x97   : > { %v543_v60 = vsel %vm4159_vm7, %v2578_v56, %v538_v52  ;;  %v2594_v61 = vsel %vm4157_vm1, %v2580_v57, %v564_v39  ;;  %v2673_v39 = vsel %vm2553_vm4, 1.0, %v2408_v50  ;;  %vm4164_vm4 = vcmp.lt.s32.totalorder %v2533_v37, 111 }
  0x98   : > { %v548_v62 = vmul.f32 %v2572_v53, %v543_v60  ;;  %v806_v17 = vsel %vm4165_vm11, %v521_v15, %v725_v12  ;;  %4213 = vst [vmem:[#allocation6_spill] sm:$0xff] %v2673_v39  ;;  %v2699_v52 = vsel %vm477_vm15, 1.0, %v2408_v50  ;;  %v2713_v60 = vsel %vm2662_vm13, 1.0, %v2408_v50  ;;  %v1381_v53 = vld [vmem:[%s4152_s4 + $0x28] sm:$0xff] }
  0x99   : > { %4218 = vst [vmem:[#allocation7_spill] sm:$0xff] %v2699_v52  ;;  %vm817_vm15 = vcmask 1043456  }
  0x9a   : > { %v724_v1 = vrot.slane %v548_v62, 5 }
  0x9c   : > { %v805_v5 = vsel %vm4165_vm11, %v520_v0, %v724_v1  ;;  %v2728_v1 = vsel %vm2686_vm3, 1.0, %v2408_v50  ;;  %vm4171_vm3 = vcmask 1040384  }
  0x9d   : > { %v2619_v7 = vsel %vm4156_vm9, %v805_v5, %v736_v63 }
  0x9e   : > { %v568_v10 = vpop.permute.xlu0 %567  ;;  %v2629_v11 = vpop.permute.xlu2 %645 }
  0x9f   : > { %v570_v13 = vsel %vm4157_vm1, %v566_v46, %v568_v10  ;;  %v573_v12 = vsel %vm4157_vm1, %v568_v10, %v2580_v57  ;;  %vm822_vm1 = vcmask 1046528  }
  0xa0   : > { %v2634_v14 = vmul.f32 %v2614_v6, %v570_v13  ;;  %v2759_v3 = vmul.f32 %v2734_v9, %v573_v12 }
  0xa2   : > { %v737_v16 = vrot.slane %v2634_v14, 2 }
  0xa4   : > { %v594_v18 = vpop.permute.xlu1 %593  ;;  %v2642_v19 = vsel %vm4156_vm9, %v806_v17, %v737_v16  ;;  %vm2715_vm9 = vcmp.lt.s32.totalorder %v321_v45, 240  ;;  %v2742_v17 = vmul.f32 %v2713_v60, %v2594_v61 }
  0xa5   : > { %vm459_vm13 = vmand %vm2715_vm9, %vm2603_vm10  ;;  %vm2765_vm10 = vcmp.ge.s32.totalorder %v355_v27, 1 }
  0xa6   : > { %v2644_v20 = vpop.permute.xlu0 %591  ;;  %v2646_v21 = vpop.permute.xlu2 %673  ;;  %v2763_v31 = vsel %vm459_vm13, 1.0, %v2408_v50  ;;  %vm2785_vm13 = vcmp.ge.s32.totalorder %v348_v32, 1  ;;  %vm457_vm6 = vmand %vm2666_vm14, %vm2765_vm10  ;;  %v761_v32 = vld.sshfl [vmem:[#allocation1 + $0x18] sm:$0xff pattern:$0x75316420]  ;;  %v2814_v14 = vsel %vm2765_vm10, 1.0, %v2408_v50 }
  0xa7   : > { %v599_v40 = vsel %vm4163_vm12, %v2644_v20, %v594_v18  ;;  %vm479_vm7 = vmand %vm2715_vm9, %vm2599_vm8  ;;  %vm4170_vm8 = vcmp.lt.s32.totalorder %v2533_v37, 112 }
  0xa8   : > { %v604_v47 = vmul.f32 %v2673_v39, %v599_v40 }
  0xaa   : > { %v748_v13 = vrot.slane %v604_v47, 7 }
  0xac   : > { %v2648_v22 = vpop.permute.xlu1 %595 }
  0xad   : > { %v598_v48 = vsel %vm4163_vm12, %v594_v18, %v2648_v22 }
  0xae   : > { %v2650_v23 = vpop.permute.xlu0 %621  ;;  %v2652_v24 = vpop.permute.xlu2 %705  ;;  %v605_v4 = vmul.f32 %v2624_v8, %v598_v48  ;;  %v760_v48 = vld.sshfl [vmem:[#allocation1 + $0x10] sm:$0xff pattern:$0x75316420] }
  0xb0   : > { %v749_v25 = vrot.slane %v605_v4, 7 }
  0xb4   : > { %v2655_v26 = vpop.permute.xlu1 %617 }
  0xb6   : > { %v624_v29 = vpop.permute.xlu0 %623  ;;  %v2657_v30 = vpop.permute.xlu2 %701 }
  0xb7   : > { %v626_v57 = vsel %vm4160_vm0, %v2650_v23, %v624_v29  ;;  %v629_v10 = vsel %vm4160_vm0, %v624_v29, %v2655_v26  ;;  %v815_v29 = vsel %vm4171_vm3, %v736_v63, %v748_v13  ;;  %v4167_v63 = vrot.slane %v2742_v17, 2 }
  0xb8   : > { %v632_v40 = vmul.f32 %v2704_v55, %v626_v57  ;;  %v633_v43 = vmul.f32 %v2614_v6, %v629_v10 }
  0xbc   : > { %v2691_v46 = vpop.permute.xlu1 %649 }
  0xbe   : > { %v620_v49 = vpop.permute.xlu0 %619  ;;  %v704_v59 = vpop.permute.xlu2 %703 }
  0xbf   : > { %v711_v44 = vsel %vm4164_vm4, %v704_v59, %v2652_v24  ;;  %v712_v0 = vsel %vm4164_vm4, %v2657_v30, %v704_v59  ;;  %v2783_v59 = vshrl.u32 %v4166_v36, 7  ;;  %v628_v4 = vsel %vm4160_vm0, %v2655_v26, %v620_v49 }
  0xc0   : > { %v715_v5 = vmul.f32 %v2699_v52, %v711_v44  ;;  %v714_v15 = vmul.f32 %v2728_v1, %v712_v0  ;;  %v4168_v44 = vrot.slane %v2759_v3, 2  ;;  %v627_v0 = vsel %vm4160_vm0, %v620_v49, %v2650_v23 }
  0xc1   : > { %vm4161_vm0 = vcmask 1041408   ;;  %v820_v23 = vsel %vm817_vm15, %v815_v29, %v760_v48  ;;  %v772_v26 = vrot.slane %v632_v40, 1  ;;  %v773_v49 = vrot.slane %v633_v43, 1 }
  0xc2   : > { %v838_v18 = vsel %vm4165_vm11, %v715_v5, 1.0  ;;  %v837_v61 = vsel %vm4165_vm11, %v714_v15, 1.0  ;;  %v816_v5 = vsel %vm4171_vm3, %v737_v16, %v749_v25  ;;  %v2819_v16 = vsel %vm2785_vm13, 1.0, %v2408_v50 }
  0xc3   : > { %2244 = vmatpush.msk.msra.mxu1 %vm817_vm15, %v838_v18  ;;  %2241 = vmatpush.msk.msra.mxu0 %vm817_vm15, %v837_v61  ;;  %v2822_v2 = vmul.f32 %v2728_v1, %v628_v4  ;;  %v2825_v15 = vmul.f32 %v2713_v60, %v627_v0  ;;  %v2828_v18 = vsel %vm457_vm6, 1.0, %v2408_v50  ;;  %v821_v57 = vsel %vm817_vm15, %v816_v5, %v761_v32 }
  0xc4   : > { %v652_v28 = vpop.permute.xlu1 %651  ;;  %v2834_v61 = vsel %vm2715_vm9, 1.0, %v2408_v50  ;;  %v2838_v25 = vsel %vm479_vm7, 1.0, %v2408_v50  ;;  %vm832_vm6 = vcmask 1044480   ;;  %v825_v48 = vsel %vm822_vm1, %v820_v23, %v772_v26  ;;  %vm400_vm7 = vmand %vm2682_vm2, %vm2785_vm13 }
  0xc5   : > { %v654_v47 = vsel %vm4162_vm5, %v2691_v46, %v652_v28  ;;  %v657_v27 = vsel %vm4162_vm5, %v652_v28, %v2629_v11  ;;  %4225 = vst [vmem:[#allocation8_spill] sm:$0xff] %v2838_v25  ;;  %v2843_v28 = vsel %vm2682_vm2, 1.0, %v2408_v50  ;;  %v2855_v0 = vsel %vm822_vm1, %v821_v57, %v773_v49 }
  0xc6   : > { %v2774_v45 = vpop.permute.xlu0 %677  ;;  %v660_v12 = vmul.f32 %v2673_v39, %v654_v47  ;;  %v661_v13 = vmul.f32 %v2763_v31, %v657_v27  ;;  %v2876_v57 = vsel %vm2666_vm14, 1.0, %v2408_v50  ;;  %vm4172_vm9 = vcmask 228352  }
  0xc7   : > { %v2986_v36 = vadd.s32 104, %v2783_v59 }
  0xc8   : > { %v784_v33 = vrot.slane %v660_v12, 6  ;;  %v785_v29 = vrot.slane %v661_v13, 6 }
  0xca   : > { %v830_v41 = vsel %vm4161_vm0, %v772_v26, %v784_v33  ;;  %v831_v23 = vsel %vm4161_vm0, %v773_v49, %v785_v29  ;;  %v1090_v49 = vadd.s32 1, %v2533_v37  ;;  %v1007_v29 = vadd.s32 368, %v2783_v59 }
  0xcc   : > { %v648_v10 = vpop.permute.xlu1 %647  ;;  %vm1072_vm2 = vcmp.ge.s32.totalorder %v1007_v29, %v2897_v38 }
  0xcd   : > { %v655_v40 = vsel %vm4162_vm5, %v648_v10, %v2691_v46  ;;  %v656_v62 = vsel %vm4162_vm5, %v2629_v11, %v648_v10  ;;  %v770_v46 = vrot.slane %v2822_v2, 1  ;;  %v4169_v11 = vrot.slane %v2825_v15, 1 }
  0xce   : > { %v708_v43 = vpop.permute.xlu0 %707  ;;  %v658_v47 = vmul.f32 %v2819_v16, %v656_v62  ;;  %v659_v27 = vmul.f32 %v2828_v18, %v655_v40  ;;  %v2902_v62 = vadd.s32 504, %v2783_v59  ;;  %v4230_v2 = vrot.slane %v2825_v15, 1 }
  0xcf   : > { %v710_v4 = vsel %vm4164_vm4, %v2652_v24, %v708_v43  ;;  %v713_v32 = vsel %vm4164_vm4, %v708_v43, %v2657_v30  ;;  %v2879_v24 = vsel %vm400_vm7, 1.0, %v2408_v50  ;;  %v1008_v50 = vadd.s32 376, %v2783_v59 }
  0xd0   : > { %v782_v5 = vrot.slane %v658_v47, 6  ;;  %v783_v12 = vrot.slane %v659_v27, 6  ;;  %v716_v13 = vmul.f32 %v2704_v55, %v710_v4  ;;  %v717_v54 = vmul.f32 %v2838_v25, %v713_v32 }
  0xd1   : > { %v2905_v43 = vadd.s32 120, %v2783_v59  ;;  %v2908_v47 = vadd.s32 248, %v2783_v59  ;;  %vm1073_vm14 = vcmp.ge.s32.totalorder %v1008_v50, %v2897_v38  ;;  %v2917_v32 = vmul.u32 256, %v1090_v49 }
  0xd2   : > { %v839_v30 = vsel %vm4165_vm11, %v716_v13, 1.0  ;;  %v840_v10 = vsel %vm4165_vm11, %v717_v54, 1.0  ;;  %v2886_v40 = vsel %vm4161_vm0, %v770_v46, %v782_v5  ;;  %v2891_v26 = vsel %vm4161_vm0, %v4169_v11, %v783_v12 }
  0xd3   : > { %2247 = vmatpush.msk.msra.mxu2 %vm817_vm15, %v839_v30  ;;  %2250 = vmatpush.msk.msra.mxu3 %vm817_vm15, %v840_v10  ;;  %vm1089_vm10 = vcmp.ge.s32.totalorder %v2902_v62, %v2897_v38  ;;  %vm1139_vm13 = vcmp.lt.s32.totalorder %v1008_v50, %v2917_v32  ;;  %vm1138_vm7 = vcmp.lt.s32.totalorder %v1007_v29, %v2917_v32 }
  0xd4   : > { %v680_v33 = vpop.permute.xlu1 %679  ;;  %vm1155_vm0 = vcmp.lt.s32.totalorder %v2902_v62, %v2917_v32  ;;  %vm1041_vm5 = vcmp.ge.s32.totalorder %v2905_v43, %v2897_v38  ;;  %vm1123_vm11 = vcmp.lt.s32.totalorder %v2908_v47, %v2917_v32  ;;  %vm2966_vm4 = vmand %vm1073_vm14, %vm1139_vm13  ;;  %vm4228_vm13 = vcmp.lt.s32.totalorder %v2533_v37, 16 }
  0xd5   : > { %v682_v27 = vsel %vm4170_vm8, %v2774_v45, %v680_v33  ;;  %v685_v4 = vsel %vm4170_vm8, %v680_v33, %v2646_v21  ;;  %vm1202_vm14 = vmand %vm1072_vm2, %vm1138_vm7  ;;  %v970_v62 = vadd.s32 72, %v2783_v59 }
  0xd6   : > { %v590_v5 = vpop.permute.xlu0 %589  ;;  %v689_v12 = vmul.f32 %v2834_v61, %v685_v4  ;;  %v796_v13 = vrot.slane %v682_v27, 3  ;;  %v758_v4 = vld.sshfl [vmem:[#allocation1] sm:$0xff pattern:$0x75316420] }
  0xd7   : > { %v600_v54 = vsel %vm4163_vm12, %v590_v5, %v2644_v20  ;;  %v601_v30 = vsel %vm4163_vm12, %v2648_v22, %v590_v5  ;;  %vm1107_vm12 = vcmp.lt.s32.totalorder %v2905_v43, %v2917_v32 }
  0xd8   : > { %v602_v10 = vmul.f32 %v2819_v16, %v601_v30  ;;  %v603_v49 = vmul.f32 %v2814_v14, %v600_v54  ;;  %v797_v33 = vrot.slane %v689_v12, 3  ;;  %v835_v27 = vsel %vm832_vm6, %v830_v41, %v796_v13  ;;  %v759_v12 = vld.sshfl [vmem:[#allocation1 + $0x8] sm:$0xff pattern:$0x75316420]  ;;  %v2948_v41 = vld [vmem:[%s4149_s1] sm:$0xff] }
  0xd9   : > { %919 = vmatpush.msra.mxu2 %v835_v27  ;;  %v1006_v13 = vadd.s32 360, %v2783_v59  ;;  %v1023_v54 = vadd.s32 496, %v2783_v59  ;;  %v975_v30 = vadd.s32 112, %v2783_v59  ;;  %v2971_v27 = vadd.s32 352, %v2783_v59 }
  0xda   : > { %v746_v20 = vrot.slane %v602_v10, 7  ;;  %v747_v22 = vrot.slane %v603_v49, 7  ;;  %v836_v5 = vsel %vm832_vm6, %v831_v23, %v797_v33  ;;  %v2954_v10 = vadd.s32 240, %v2783_v59 }
  0xdb   : > { %920 = vmatpush.msra.mxu2 %v825_v48  ;;  %942 = vmatpush.msra.mxu3 %v836_v5  ;;  %v2974_v5 = vadd.s32 488, %v2783_v59  ;;  %vm1137_vm2 = vcmp.lt.s32.totalorder %v1006_v13, %v2917_v32  ;;  %v966_v33 = vadd.s32 40, %v2783_v59 }
  0xdc   : > { %v676_v23 = vpop.permute.xlu1 %675  ;;  %v813_v48 = vsel %vm4171_vm3, %v4168_v44, %v746_v20  ;;  %v814_v49 = vsel %vm4171_vm3, %v4167_v63, %v747_v22 }
  0xdd   : > { %v683_v20 = vsel %vm4170_vm8, %v676_v23, %v2774_v45  ;;  %v684_v22 = vsel %vm4170_vm8, %v2646_v21, %v676_v23  ;;  %921 = vmatpush.msra.mxu2 %v2619_v7  ;;  %943 = vmatpush.msra.mxu3 %v2855_v0  ;;  %v818_v50 = vsel %vm817_vm15, %v813_v48, %v758_v4  ;;  %vm4229_vm8 = vmmov %vm4228_vm13  ;;  %v2409_v4 = vmov 0.00390625  }
  0xde   : > { %v534_v63 = vpop.permute.xlu0 %533  ;;  %v687_v44 = vmul.f32 %v2876_v57, %v683_v20  ;;  %v794_v11 = vrot.slane %v684_v22, 3  ;;  %2248 = vmatmul.msk.f32.vlgmr.msra.gmra.mxu2 %vm4172_vm9, %v2948_v41  ;;  %v823_v21 = vsel %vm822_vm1, %v818_v50, %v770_v46  ;;  %v819_v7 = vsel %vm817_vm15, %v814_v49, %v759_v12  ;;  %vm3020_vm15 = vmand %vm1089_vm10, %vm1155_vm0 }
  0xdf   : > { %v3002_v45 = vsel %vm4228_vm13, %v534_v63, %v2578_v56  ;;  %v545_v0 = vsel %vm4229_vm8, %v2530_v35, %v534_v63  ;;  %944 = vmatpush.msra.mxu3 %v2642_v19  ;;  %v824_v46 = vsel %vm822_vm1, %v819_v7, %v4230_v2  ;;  %2285 = vmatpush.msk.msrb.mxu2 %vm2966_vm4, %v2409_v4  ;;  %v3025_v35 = vadd.s32 232, %v2783_v59  ;;  %vm3040_vm1 = vmand %vm1041_vm5, %vm1107_vm12 }
  0xe0   : > { %v546_v19 = vmul.f32 %v2843_v28, %v545_v0  ;;  %v723_v63 = vrot.slane %v3002_v45, 5  ;;  %v795_v15 = vrot.slane %v687_v44, 3  ;;  %v833_v29 = vsel %vm832_vm6, %v2886_v40, %v794_v11  ;;  %2251 = vmatmul.msk.f32.vlgmr.msra.gmra.mxu3 %vm4172_vm9, %v2948_v41 }
  0xe1   : > { %873 = vmatpush.msra.mxu0 %v833_v29  ;;  %2286 = vmatpush.msk.msrb.mxu2 %vm1202_vm14, %v2409_v4  ;;  %vm4235_vm4 = vcmp.ge.s32.totalorder %v2908_v47, %v2897_v38  ;;  %vm1071_vm8 = vcmp.ge.s32.totalorder %v1006_v13, %v2897_v38  ;;  %vm1088_vm10 = vcmp.ge.s32.totalorder %v1023_v54, %v2897_v38  ;;  %v1004_v11 = vadd.s32 344, %v2783_v59  ;;  %v3068_v47 = vld [vmem:[%s4149_s1 + $0x8] sm:$0xff] }
  0xe2   : > { %vm3050_vm0 = vmand %vm4235_vm4, %vm1123_vm11  ;;  %v722_v40 = vrot.slane %v546_v19, 5  ;;  %v834_v43 = vsel %vm832_vm6, %v2891_v26, %v795_v15  ;;  %2301 = vmatpush.msk.msrb.mxu3 %vm3020_vm15, %v2409_v4  ;;  %vm1154_vm12 = vcmp.lt.s32.totalorder %v1023_v54, %v2917_v32  ;;  %vm1040_vm5 = vcmp.ge.s32.totalorder %v975_v30, %v2897_v38 }
  0xe3   : > { %vm1201_vm11 = vmand %vm1071_vm8, %vm1137_vm2  ;;  %874 = vmatpush.msra.mxu0 %v823_v21  ;;  %896 = vmatpush.msra.mxu1 %v834_v43  ;;  %vm1106_vm14 = vcmp.lt.s32.totalorder %v975_v30, %v2917_v32  ;;  %vm1056_vm6 = vcmp.ge.s32.totalorder %v2954_v10, %v2897_v38  ;;  %vm1122_vm13 = vcmp.lt.s32.totalorder %v2954_v10, %v2917_v32  ;;  %v1021_v26 = vadd.s32 480, %v2783_v59 }
  0xe4   : > { %vm1218_vm7 = vmand %vm1088_vm10, %vm1154_vm12  ;;  %v506_v12 = vpop.permute.xlu1 %505  ;;  %2287 = vmatpush.msk.msrb.mxu2 %vm1201_vm11, %v2409_v4  ;;  %vm1070_vm4 = vcmp.ge.s32.totalorder %v2971_v27, %v2897_v38  ;;  %vm1136_vm8 = vcmp.lt.s32.totalorder %v2971_v27, %v2917_v32  ;;  %vm1087_vm2 = vcmp.ge.s32.totalorder %v2974_v5, %v2897_v38  ;;  %v973_v54 = vadd.s32 96, %v2783_v59 }
  0xe5   : > { %2302 = vmatpush.msk.msrb.mxu3 %vm1218_vm7, %v2409_v4  ;;  %vm3078_vm15 = vmand %vm1040_vm5, %vm1106_vm14  ;;  %vm4240_vm10 = vcmp.lt.s32.totalorder %v2533_v37, 17  ;;  %897 = vmatpush.msra.mxu1 %v824_v46  ;;  %vm1153_vm5 = vcmp.lt.s32.totalorder %v2974_v5, %v2917_v32  ;;  %vm1135_vm7 = vcmp.lt.s32.totalorder %v1004_v11, %v2917_v32  ;;  %v4250_v27 = vrot.slane %v2759_v3, 2 }
  0xe6   : > { %v516_v30 = vsel %vm4240_vm10, %v506_v12, %v2528_v34  ;;  %vm4241_vm11 = vmmov %vm4240_vm10  ;;  %2249 = vmatmul.msk.f32.gmra.mxu2 %vm4172_vm9, %v3068_v47  ;;  %vm1038_vm3 = vcmp.ge.s32.totalorder %v973_v54, %v2897_v38  ;;  %v4252_v20 = vrot.slane %v2742_v17, 2  ;;  %v989_v50 = vadd.s32 224, %v2783_v59 }
  0xe7   : > { %v517_v10 = vsel %vm4241_vm11, %v2536_v42, %v506_v12  ;;  %vm3095_vm12 = vmand %vm1056_vm6, %vm1122_vm13  ;;  %v519_v49 = vmul.f32 %v2814_v14, %v516_v30  ;;  %vm1105_vm6 = vcmp.lt.s32.totalorder %v2986_v36, %v2917_v32  ;;  %vm1121_vm11 = vcmp.lt.s32.totalorder %v3025_v35, %v2917_v32 }
  0xe8   : > { %v518_v48 = vmul.f32 %v2879_v24, %v517_v10  ;;  %vm1200_vm14 = vmand %vm1070_vm4, %vm1136_vm8  ;;  %vm4244_vm8 = vcmask 1042432   ;;  %vm4246_vm13 = vcmask 228352   ;;  %vm4251_vm4 = vcmask 1045504  }
  0xe9   : > { %2288 = vmatpush.msk.msrb.mxu2 %vm1200_vm14, %v2409_v4  ;;  %vm1217_vm10 = vmand %vm1087_vm2, %vm1153_vm5  ;;  %2252 = vmatmul.msk.f32.gmra.mxu3 %vm4246_vm13, %v3068_v47  ;;  %vm4247_vm14 = vcmp.ge.s32.totalorder %v2986_v36, %v2897_v38  ;;  %vm1152_vm5 = vcmp.lt.s32.totalorder %v1021_v26, %v2917_v32  ;;  %v1003_v3 = vadd.s32 336, %v2783_v59  ;;  %v1020_v21 = vadd.s32 472, %v2783_v59 }
  0xea   : > { %v803_v34 = vsel %vm4244_vm8, %v518_v48, %v722_v40  ;;  %vm4245_vm9 = vmmov %vm4244_vm8  ;;  %2303 = vmatpush.msk.msrb.mxu3 %vm1217_vm10, %v2409_v4  ;;  %vm1104_vm8 = vcmp.lt.s32.totalorder %v973_v54, %v2917_v32  ;;  %v972_v7 = vadd.s32 88, %v2783_v59  ;;  %v988_v45 = vadd.s32 216, %v2783_v59 }
  0xeb   : > { %v804_v42 = vsel %vm4245_vm9, %v519_v49, %v723_v63  ;;  %vm3127_vm2 = vmand %vm4247_vm14, %vm1105_vm6  ;;  %v808_v5 = vsel %vm4251_vm4, %v803_v34, %v4250_v27  ;;  %vm4254_vm6 = vcmp.ge.s32.totalorder %v3025_v35, %v2897_v38  ;;  %vm4260_vm10 = vcmask 228352  }
  0xec   : > { %vm4253_vm9 = vmmov %vm4251_vm4  ;;  %875 = vmatpush.msra.mxu0 %v808_v5  ;;  %vm4257_vm4 = vcmp.ge.s32.totalorder %v1004_v11, %v2897_v38  ;;  %v1002_v0 = vadd.s32 328, %v2783_v59  ;;  %v1019_v2 = vadd.s32 464, %v2783_v59  ;;  %v971_v56 = vadd.s32 80, %v2783_v59 }
  0xed   : > { %v809_v22 = vsel %vm4253_vm9, %v804_v42, %v4252_v20  ;;  %vm3143_vm13 = vmand %vm4254_vm6, %vm1121_vm11  ;;  %2242 = vmatmul.msk.f32.vlgmr.msra.gmra.mxu0 %vm4260_vm10, %v2948_v41  ;;  %vm1054_vm6 = vcmp.ge.s32.totalorder %v989_v50, %v2897_v38  ;;  %v987_v35 = vadd.s32 208, %v2783_v59  ;;  %v1001_v19 = vadd.s32 320, %v2783_v59 }
  0xee   : > { %898 = vmatpush.msra.mxu1 %v809_v22  ;;  %vm3153_vm14 = vmand %vm4257_vm4, %vm1135_vm7  ;;  %vm4262_vm7 = vcmp.ge.s32.totalorder %v1021_v26, %v2897_v38  ;;  %vm1120_vm4 = vcmp.lt.s32.totalorder %v989_v50, %v2917_v32  ;;  %2253 = vmatpush.msk.msrb.mxu0 %vm3040_vm1, %v2409_v4  ;;  %v1018_v15 = vadd.s32 456, %v2783_v59  ;;  %v986_v11 = vadd.s32 200, %v2783_v59 }
  0xef   : > { %vm4261_vm11 = vmmov %vm4260_vm10  ;;  %2289 = vmatpush.msk.msrb.mxu2 %vm3153_vm14, %v2409_v4  ;;  %v1000_v40 = vadd.s32 312, %v2783_v59  ;;  %v1017_v43 = vadd.s32 448, %v2783_v59  ;;  %v985_v26 = vadd.s32 192, %v2783_v59  ;;  %v999_v12 = vadd.s32 304, %v2783_v59 }
  0xf0   : > { %2245 = vmatmul.msk.f32.vlgmr.msra.gmra.mxu1 %vm4261_vm11, %v2948_v41  ;;  %vm1216_vm9 = vmand %vm4262_vm7, %vm1152_vm5  ;;  %vm1068_vm5 = vcmp.ge.s32.totalorder %v1003_v3, %v2897_v38  ;;  %vm1134_vm11 = vcmp.lt.s32.totalorder %v1003_v3, %v2917_v32  ;;  %vm1085_vm7 = vcmp.ge.s32.totalorder %v1020_v21, %v2897_v38  ;;  %2254 = vmatpush.msk.msrb.mxu0 %vm3078_vm15, %v2409_v4  ;;  %v1016_v13 = vadd.s32 440, %v2783_v59 }
  0xf1   : > { %2269 = vmatpush.msk.msrb.mxu1 %vm3050_vm0, %v2409_v4  ;;  %vm3182_vm10 = vmand %vm1038_vm3, %vm1104_vm8  ;;  %2304 = vmatpush.msk.msrb.mxu3 %vm1216_vm9, %v2409_v4  ;;  %vm1151_vm3 = vcmp.lt.s32.totalorder %v1020_v21, %v2917_v32  ;;  %vm1103_vm8 = vcmp.lt.s32.totalorder %v972_v7, %v2917_v32  ;;  %vm1053_vm9 = vcmp.ge.s32.totalorder %v988_v45, %v2897_v38  ;;  %v968_v54 = vadd.s32 56, %v2783_v59 }
  0xf2   : > { %vm3194_vm1 = vmand %vm1054_vm6, %vm1120_vm4  ;;  %vm1119_vm6 = vcmp.lt.s32.totalorder %v988_v45, %v2917_v32  ;;  %vm1067_vm0 = vcmp.ge.s32.totalorder %v1002_v0, %v2897_v38  ;;  %vm1133_vm15 = vcmp.lt.s32.totalorder %v1002_v0, %v2917_v32  ;;  %2255 = vmatpush.msk.msrb.mxu0 %vm3127_vm2, %v2409_v4  ;;  %v984_v30 = vadd.s32 184, %v2783_v59 }
  0xf3   : > { %2270 = vmatpush.msk.msrb.mxu1 %vm3095_vm12, %v2409_v4  ;;  %vm1198_vm14 = vmand %vm1068_vm5, %vm1134_vm11  ;;  %vm4267_vm12 = vcmp.ge.s32.totalorder %v972_v7, %v2897_v38  ;;  %vm1084_vm11 = vcmp.ge.s32.totalorder %v1019_v2, %v2897_v38  ;;  %v998_v10 = vadd.s32 296, %v2783_v59  ;;  %v1015_v23 = vadd.s32 432, %v2783_v59 }
  0xf4   : > { %2290 = vmatpush.msk.msrb.mxu2 %vm1198_vm14, %v2409_v4  ;;  %vm1215_vm4 = vmand %vm1085_vm7, %vm1151_vm3  ;;  %vm1150_vm7 = vcmp.lt.s32.totalorder %v1019_v2, %v2917_v32  ;;  %vm1102_vm3 = vcmp.lt.s32.totalorder %v971_v56, %v2917_v32  ;;  %2256 = vmatpush.msk.msrb.mxu0 %vm3182_vm10, %v2409_v4  ;;  %vm1052_vm14 = vcmp.ge.s32.totalorder %v987_v35, %v2897_v38  ;;  %vm4274_vm10 = vcmask 228352  }
  0xf5   : > { %2271 = vmatpush.msk.msrb.mxu1 %vm3143_vm13, %v2409_v4  ;;  %vm3227_vm5 = vmand %vm4267_vm12, %vm1103_vm8  ;;  %2305 = vmatpush.msk.msrb.mxu3 %vm1215_vm4, %v2409_v4  ;;  %vm1036_vm13 = vcmp.ge.s32.totalorder %v971_v56, %v2897_v38  ;;  %vm1132_vm4 = vcmp.lt.s32.totalorder %v1001_v19, %v2917_v32  ;;  %vm1083_vm12 = vcmp.ge.s32.totalorder %v1018_v15, %v2897_v38  ;;  %v967_v48 = vadd.s32 48, %v2783_v59 }
  0xf6   : > { %vm3237_vm2 = vmand %vm1053_vm9, %vm1119_vm6  ;;  %vm1118_vm9 = vcmp.lt.s32.totalorder %v987_v35, %v2917_v32  ;;  %2243 = vmatmul.msk.f32.gmra.mxu0 %vm4274_vm10, %v3068_v47  ;;  %v983_v49 = vadd.s32 176, %v2783_v59  ;;  %v997_v34 = vadd.s32 288, %v2783_v59  ;;  %v1014_v42 = vadd.s32 424, %v2783_v59 }
  0xf7   : > { %2272 = vmatpush.msk.msrb.mxu1 %vm3194_vm1, %v2409_v4  ;;  %vm3254_vm8 = vmand %vm1067_vm0, %vm1133_vm15  ;;  %vm1066_vm0 = vcmp.ge.s32.totalorder %v1001_v19, %v2897_v38  ;;  %2257 = vmatpush.msk.msrb.mxu0 %vm3227_vm5, %v2409_v4  ;;  %v982_v27 = vadd.s32 168, %v2783_v59  ;;  %v996_v5 = vadd.s32 280, %v2783_v59  ;;  %v1013_v20 = vadd.s32 416, %v2783_v59 }
  0xf8   : > { %vm4275_vm6 = vmmov %vm4274_vm10  ;;  %2291 = vmatpush.msk.msrb.mxu2 %vm3254_vm8, %v2409_v4  ;;  %vm1117_vm8 = vcmp.lt.s32.totalorder %v986_v11, %v2917_v32  ;;  %vm1131_vm10 = vcmp.lt.s32.totalorder %v1000_v40, %v2917_v32  ;;  %v965_v22 = vadd.s32 32, %v2783_v59  ;;  %v981_v36 = vadd.s32 160, %v2783_v59 }
  0xf9   : > { %2246 = vmatmul.msk.f32.gmra.mxu1 %vm4275_vm6, %v3068_v47  ;;  %vm1214_vm1 = vmand %vm1084_vm11, %vm1150_vm7  ;;  %vm1149_vm11 = vcmp.lt.s32.totalorder %v1018_v15, %v2917_v32  ;;  %vm1035_vm7 = vcmp.ge.s32.totalorder %v970_v62, %v2897_v38  ;;  %v969_v47 = vadd.s32 64, %v2783_v59  ;;  %v995_v50 = vadd.s32 272, %v2783_v59 }
  0xfa   : > { %2273 = vmatpush.msk.msrb.mxu1 %vm3237_vm2, %v2409_v4  ;;  %vm1166_vm15 = vmand %vm1036_vm13, %vm1102_vm3  ;;  %2306 = vmatpush.msk.msrb.mxu3 %vm1214_vm1, %v2409_v4  ;;  %vm1101_vm2 = vcmp.lt.s32.totalorder %v970_v62, %v2917_v32  ;;  %vm1051_vm3 = vcmp.ge.s32.totalorder %v986_v11, %v2897_v38  ;;  %vm1082_vm1 = vcmp.ge.s32.totalorder %v1017_v43, %v2897_v38  ;;  %v1012_v17 = vadd.s32 408, %v2783_v59 }
  0xfb   : > { %vm1182_vm5 = vmand %vm1052_vm14, %vm1118_vm9  ;;  %2258 = vmatpush.msk.msrb.mxu0 %vm1166_vm15, %v2409_v4  ;;  %vm1065_vm9 = vcmp.ge.s32.totalorder %v1000_v40, %v2897_v38  ;;  %vm1034_vm15 = vcmp.ge.s32.totalorder %v969_v47, %v2897_v38  ;;  %v964_v3 = vadd.s32 24, %v2783_v59  ;;  %v980_v21 = vadd.s32 152, %v2783_v59 }
  0xfc   : > { %2274 = vmatpush.msk.msrb.mxu1 %vm1182_vm5, %v2409_v4  ;;  %vm1196_vm13 = vmand %vm1066_vm0, %vm1132_vm4  ;;  %vm1148_vm0 = vcmp.lt.s32.totalorder %v1017_v43, %v2917_v32  ;;  %vm1050_vm5 = vcmp.ge.s32.totalorder %v985_v26, %v2897_v38  ;;  %v994_v7 = vadd.s32 264, %v2783_v59  ;;  %v1011_v45 = vadd.s32 400, %v2783_v59 }
  0xfd   : > { %2292 = vmatpush.msk.msrb.mxu2 %vm1196_vm13, %v2409_v4  ;;  %vm1213_vm14 = vmand %vm1083_vm12, %vm1149_vm11  ;;  %vm1100_vm12 = vcmp.lt.s32.totalorder %v969_v47, %v2917_v32  ;;  %vm1064_vm13 = vcmp.ge.s32.totalorder %v999_v12, %v2897_v38  ;;  %v963_v0 = vadd.s32 16, %v2783_v59  ;;  %v979_v41 = vadd.s32 144, %v2783_v59 }
  0xfe   : > { %2307 = vmatpush.msk.msrb.mxu3 %vm1213_vm14, %v2409_v4  ;;  %vm1165_vm6 = vmand %vm1035_vm7, %vm1101_vm2  ;;  %vm1116_vm7 = vcmp.lt.s32.totalorder %v985_v26, %v2917_v32  ;;  %vm1081_vm14 = vcmp.ge.s32.totalorder %v1016_v13, %v2897_v38  ;;  %v993_v2 = vadd.s32 256, %v2783_v59  ;;  %v1010_v46 = vadd.s32 392, %v2783_v59 }
  0xff   : > { %2259 = vmatpush.msk.msrb.mxu0 %vm1165_vm6, %v2409_v4  ;;  %vm1181_vm4 = vmand %vm1051_vm3, %vm1117_vm8  ;;  %vm1130_vm3 = vcmp.lt.s32.totalorder %v999_v12, %v2917_v32  ;;  %vm1033_vm6 = vcmp.ge.s32.totalorder %v968_v54, %v2897_v38  ;;  %v962_v56 = vadd.s32 8, %v2783_v59  ;;  %v978_v35 = vadd.s32 136, %v2783_v59 }
 0x100   : > { %2275 = vmatpush.msk.msrb.mxu1 %vm1181_vm4, %v2409_v4  ;;  %vm1195_vm11 = vmand %vm1065_vm9, %vm1131_vm10  ;;  %vm1147_vm9 = vcmp.lt.s32.totalorder %v1016_v13, %v2917_v32  ;;  %vm1049_vm4 = vcmp.ge.s32.totalorder %v984_v30, %v2897_v38  ;;  %v1009_v19 = vadd.s32 384, %v2783_v59  ;;  %v977_v63 = vadd.s32 128, %v2783_v59 }
 0x101   : > { %2293 = vmatpush.msk.msrb.mxu2 %vm1195_vm11, %v2409_v4  ;;  %vm1212_vm2 = vmand %vm1082_vm1, %vm1148_vm0  ;;  %vm1099_vm1 = vcmp.lt.s32.totalorder %v968_v54, %v2917_v32  ;;  %vm1063_vm11 = vcmp.ge.s32.totalorder %v998_v10, %v2897_v38 }
 0x102   : > { %2308 = vmatpush.msk.msrb.mxu3 %vm1212_vm2, %v2409_v4  ;;  %vm1164_vm8 = vmand %vm1034_vm15, %vm1100_vm12  ;;  %vm1115_vm15 = vcmp.lt.s32.totalorder %v984_v30, %v2917_v32  ;;  %vm1080_vm2 = vcmp.ge.s32.totalorder %v1015_v23, %v2897_v38 }
 0x103   : > { %2260 = vmatpush.msk.msrb.mxu0 %vm1164_vm8, %v2409_v4  ;;  %vm1180_vm10 = vmand %vm1050_vm5, %vm1116_vm7  ;;  %vm1129_vm5 = vcmp.lt.s32.totalorder %v998_v10, %v2917_v32  ;;  %vm1032_vm8 = vcmp.ge.s32.totalorder %v967_v48, %v2897_v38 }
 0x104   : > { %2276 = vmatpush.msk.msrb.mxu1 %vm1180_vm10, %v2409_v4  ;;  %vm1194_vm0 = vmand %vm1064_vm13, %vm1130_vm3  ;;  %vm1146_vm13 = vcmp.lt.s32.totalorder %v1015_v23, %v2917_v32  ;;  %vm1048_vm10 = vcmp.ge.s32.totalorder %v983_v49, %v2897_v38 }
 0x105   : > { %2294 = vmatpush.msk.msrb.mxu2 %vm1194_vm0, %v2409_v4  ;;  %vm1211_vm12 = vmand %vm1081_vm14, %vm1147_vm9  ;;  %vm1098_vm14 = vcmp.lt.s32.totalorder %v967_v48, %v2917_v32  ;;  %vm1062_vm0 = vcmp.ge.s32.totalorder %v997_v34, %v2897_v38  ;;  %v4173_v48 = vmov 1.0  }
 0x106   : > { %2309 = vmatpush.msk.msrb.mxu3 %vm1211_vm12, %v2409_v4  ;;  %vm1163_vm7 = vmand %vm1033_vm6, %vm1099_vm1  ;;  %vm1114_vm6 = vcmp.lt.s32.totalorder %v983_v49, %v2917_v32  ;;  %vm1079_vm12 = vcmp.ge.s32.totalorder %v1014_v42, %v2897_v38 }
 0x107   : > { %2261 = vmatpush.msk.msrb.mxu0 %vm1163_vm7, %v2409_v4  ;;  %vm1179_vm3 = vmand %vm1049_vm4, %vm1115_vm15  ;;  %vm1128_vm4 = vcmp.lt.s32.totalorder %v997_v34, %v2917_v32  ;;  %vm1031_vm7 = vcmp.ge.s32.totalorder %v966_v33, %v2897_v38 }
 0x108   : > { %2277 = vmatpush.msk.msrb.mxu1 %vm1179_vm3, %v2409_v4  ;;  %vm1193_vm9 = vmand %vm1063_vm11, %vm1129_vm5  ;;  %vm1145_vm11 = vcmp.lt.s32.totalorder %v1014_v42, %v2917_v32  ;;  %vm1047_vm3 = vcmp.ge.s32.totalorder %v982_v27, %v2897_v38 }
 0x109   : > { %2295 = vmatpush.msk.msrb.mxu2 %vm1193_vm9, %v2409_v4  ;;  %vm1210_vm1 = vmand %vm1080_vm2, %vm1146_vm13  ;;  %vm1097_vm2 = vcmp.lt.s32.totalorder %v966_v33, %v2917_v32  ;;  %vm1061_vm9 = vcmp.ge.s32.totalorder %v996_v5, %v2897_v38 }
 0x10a   : > { %2310 = vmatpush.msk.msrb.mxu3 %vm1210_vm1, %v2409_v4  ;;  %vm1162_vm15 = vmand %vm1032_vm8, %vm1098_vm14  ;;  %vm1113_vm8 = vcmp.lt.s32.totalorder %v982_v27, %v2917_v32  ;;  %vm1078_vm1 = vcmp.ge.s32.totalorder %v1013_v20, %v2897_v38 }
 0x10b   : > { %2262 = vmatpush.msk.msrb.mxu0 %vm1162_vm15, %v2409_v4  ;;  %vm1178_vm5 = vmand %vm1048_vm10, %vm1114_vm6  ;;  %vm1127_vm10 = vcmp.lt.s32.totalorder %v996_v5, %v2917_v32  ;;  %vm1030_vm15 = vcmp.ge.s32.totalorder %v965_v22, %v2897_v38 }
 0x10c   : > { %2278 = vmatpush.msk.msrb.mxu1 %vm1178_vm5, %v2409_v4  ;;  %vm1192_vm13 = vmand %vm1062_vm0, %vm1128_vm4  ;;  %vm1144_vm0 = vcmp.lt.s32.totalorder %v1013_v20, %v2917_v32  ;;  %vm1046_vm5 = vcmp.ge.s32.totalorder %v981_v36, %v2897_v38 }
 0x10d   : > { %2296 = vmatpush.msk.msrb.mxu2 %vm1192_vm13, %v2409_v4  ;;  %vm1209_vm14 = vmand %vm1079_vm12, %vm1145_vm11  ;;  %vm1096_vm12 = vcmp.lt.s32.totalorder %v965_v22, %v2917_v32  ;;  %vm1060_vm13 = vcmp.ge.s32.totalorder %v995_v50, %v2897_v38 }
 0x10e   : > { %2311 = vmatpush.msk.msrb.mxu3 %vm1209_vm14, %v2409_v4  ;;  %vm1161_vm6 = vmand %vm1031_vm7, %vm1097_vm2  ;;  %vm1112_vm7 = vcmp.lt.s32.totalorder %v981_v36, %v2917_v32  ;;  %vm1126_vm14 = vcmp.lt.s32.totalorder %v995_v50, %v2917_v32 }
 0x10f   : > { %2263 = vmatpush.msk.msrb.mxu0 %vm1161_vm6, %v2409_v4  ;;  %vm1177_vm4 = vmand %vm1047_vm3, %vm1113_vm8  ;;  %vm1077_vm8 = vcmp.ge.s32.totalorder %v1012_v17, %v2897_v38  ;;  %vm1143_vm6 = vcmp.lt.s32.totalorder %v1012_v17, %v2917_v32 }
 0x110   : > { %2279 = vmatpush.msk.msrb.mxu1 %vm1177_vm4, %v2409_v4  ;;  %vm1191_vm11 = vmand %vm1061_vm9, %vm1127_vm10  ;;  %vm1095_vm4 = vcmp.lt.s32.totalorder %v964_v3, %v2917_v32 }
 0x111   : > { %2297 = vmatpush.msk.msrb.mxu2 %vm1191_vm11, %v2409_v4  ;;  %vm1208_vm2 = vmand %vm1078_vm1, %vm1144_vm0  ;;  %vm1029_vm0 = vcmp.ge.s32.totalorder %v964_v3, %v2897_v38 }
 0x112   : > { %2312 = vmatpush.msk.msrb.mxu3 %vm1208_vm2, %v2409_v4  ;;  %vm1160_vm3 = vmand %vm1030_vm15, %vm1096_vm12  ;;  %vm1045_vm15 = vcmp.ge.s32.totalorder %v980_v21, %v2897_v38  ;;  %vm1111_vm12 = vcmp.lt.s32.totalorder %v980_v21, %v2917_v32  ;;  %vm1076_vm2 = vcmp.ge.s32.totalorder %v1011_v45, %v2897_v38 }
 0x113   : > { %2264 = vmatpush.msk.msrb.mxu0 %vm1160_vm3, %v2409_v4  ;;  %vm1176_vm9 = vmand %vm1046_vm5, %vm1112_vm7  ;;  %vm1059_vm5 = vcmp.ge.s32.totalorder %v994_v7, %v2897_v38  ;;  %vm1125_vm7 = vcmp.lt.s32.totalorder %v994_v7, %v2917_v32 }
 0x114   : > { %2280 = vmatpush.msk.msrb.mxu1 %vm1176_vm9, %v2409_v4  ;;  %vm1190_vm10 = vmand %vm1060_vm13, %vm1126_vm14  ;;  %vm1142_vm13 = vcmp.lt.s32.totalorder %v1011_v45, %v2917_v32  ;;  %vm1094_vm9 = vcmp.lt.s32.totalorder %v963_v0, %v2917_v32 }
 0x115   : > { %2298 = vmatpush.msk.msrb.mxu2 %vm1190_vm10, %v2409_v4  ;;  %vm1207_vm1 = vmand %vm1077_vm8, %vm1143_vm6  ;;  %vm1028_vm6 = vcmp.ge.s32.totalorder %v963_v0, %v2897_v38  ;;  %vm1044_vm10 = vcmp.ge.s32.totalorder %v979_v41, %v2897_v38 }
 0x116   : > { %2313 = vmatpush.msk.msrb.mxu3 %vm1207_vm1, %v2409_v4  ;;  %vm1159_vm11 = vmand %vm1029_vm0, %vm1095_vm4  ;;  %vm1110_vm1 = vcmp.lt.s32.totalorder %v979_v41, %v2917_v32  ;;  %vm1058_vm4 = vcmp.ge.s32.totalorder %v993_v2, %v2897_v38 }
 0x117   : > { %2265 = vmatpush.msk.msrb.mxu0 %vm1159_vm11, %v2409_v4  ;;  %vm1175_vm14 = vmand %vm1045_vm15, %vm1111_vm12  ;;  %vm1124_vm15 = vcmp.lt.s32.totalorder %v993_v2, %v2917_v32  ;;  %vm1075_vm12 = vcmp.ge.s32.totalorder %v1010_v46, %v2897_v38  ;;  %vm1141_vm11 = vcmp.lt.s32.totalorder %v1010_v46, %v2917_v32 }
 0x118   : > { %2281 = vmatpush.msk.msrb.mxu1 %vm1175_vm14, %v2409_v4  ;;  %vm1189_vm3 = vmand %vm1059_vm5, %vm1125_vm7  ;;  %vm1027_vm7 = vcmp.ge.s32.totalorder %v962_v56, %v2897_v38  ;;  %vm1043_vm14 = vcmp.ge.s32.totalorder %v978_v35, %v2897_v38 }
 0x119   : > { %2299 = vmatpush.msk.msrb.mxu2 %vm1189_vm3, %v2409_v4  ;;  %vm1206_vm8 = vmand %vm1076_vm2, %vm1142_vm13  ;;  %vm1093_vm2 = vcmp.lt.s32.totalorder %v962_v56, %v2917_v32  ;;  %vm1109_vm3 = vcmp.lt.s32.totalorder %v978_v35, %v2917_v32 }
 0x11a   : > { %2314 = vmatpush.msk.msrb.mxu3 %vm1206_vm8, %v2409_v4  ;;  %vm1158_vm0 = vmand %vm1028_vm6, %vm1094_vm9  ;;  %vm1074_vm6 = vcmp.ge.s32.totalorder %v1009_v19, %v2897_v38  ;;  %vm1140_vm9 = vcmp.lt.s32.totalorder %v1009_v19, %v2917_v32 }
 0x11b   : > { %2266 = vmatpush.msk.msrb.mxu0 %vm1158_vm0, %v2409_v4  ;;  %vm1174_vm5 = vmand %vm1044_vm10, %vm1110_vm1  ;;  %vm1026_vm1 = vcmp.ge.s32.totalorder %v2783_v59, %v2897_v38  ;;  %vm1092_vm0 = vcmp.lt.s32.totalorder %v2783_v59, %v2917_v32 }
 0x11c   : > { %2282 = vmatpush.msk.msrb.mxu1 %vm1174_vm5, %v2409_v4  ;;  %vm1188_vm13 = vmand %vm1058_vm4, %vm1124_vm15  ;;  %vm1042_vm15 = vcmp.ge.s32.totalorder %v977_v63, %v2897_v38 }
 0x11d   : > { %2300 = vmatpush.msk.msrb.mxu2 %vm1188_vm13, %v2409_v4  ;;  %vm1205_vm8 = vmand %vm1075_vm12, %vm1141_vm11  ;;  %vm1108_vm12 = vcmp.lt.s32.totalorder %v977_v63, %v2917_v32 }
 0x11e   : > { %2315 = vmatpush.msk.msrb.mxu3 %vm1205_vm8, %v2409_v4  ;;  %vm1157_vm10 = vmand %vm1027_vm7, %vm1093_vm2  ;;  %vm4280_vm2 = vcmask 1040384   ;;  %vm4284_vm8 = vcmp.lt.s32.totalorder %v2533_v37, 127 }
 0x11f   : > { %2267 = vmatpush.msk.msrb.mxu0 %vm1157_vm10, %v2409_v4  ;;  %vm1173_vm4 = vmand %vm1043_vm14, %vm1109_vm3  ;;  %vm4283_vm3 = vcmp.lt.s32.totalorder %v2533_v37, 112  ;;  %vm4286_vm10 = vcmp.lt.s32.totalorder %v2533_v37, 111 }
 0x120   : > { %2283 = vmatpush.msk.msrb.mxu1 %vm1173_vm4, %v2409_v4  ;;  %vm1204_vm11 = vmand %vm1074_vm6, %vm1140_vm9  ;;  %vm1384_vm9 = vcmask 138240  }
 0x121   : > { %2316 = vmatpush.msk.msrb.mxu3 %vm1204_vm11, %v2409_v4  ;;  %vm1156_vm5 = vmand %vm1026_vm1, %vm1092_vm0 }
 0x122   : > { %2268 = vmatpush.msk.msrb.mxu0 %vm1156_vm5, %v2409_v4  ;;  %vm1172_vm7 = vmand %vm1042_vm15, %vm1108_vm12  ;;  %vm4294_vm12 = vcmp.lt.s32.totalorder %v2533_v37, 113 }
 0x123   : > { %2284 = vmatpush.msk.msrb.mxu1 %vm1172_vm7, %v2409_v4  ;;  %vm4281_vm13 = vmmov %vm4280_vm2 }
 0x124   : > { %2317 = vmatpush.msk.msra.mxu0 %vm4280_vm2, %v4173_v48  ;;  %2354 = vmatpush.msk.msra.mxu3 %vm4281_vm13, %v4173_v48  ;;  %vm4282_vm14 = vmmov %vm4280_vm2 }
 0x125   : > { %2326 = vmatpush.msk.msra.mxu1 %vm4282_vm14, %v4173_v48  ;;  %vm4285_vm6 = vmmov %vm4284_vm8 }
 0x126   : > { %vm4288_vm1 = vmmov %vm4280_vm2 }
 0x127   : > { %vm4290_vm0 = vmmov %vm4283_vm3 }
 0x128   : > { %vm4291_vm4 = vmmov %vm4285_vm6 }
 0x129   : > { %vm4293_vm15 = vmmov %vm4291_vm4 }
 0x12a   : > { %vm4295_vm11 = vmmov %vm4290_vm0 }
 0x12b   : > { %vm4296_vm5 = vmmov %vm4290_vm0 }
 0x12c   : > { %vm4298_vm7 = vmmov %vm4294_vm12 }
 0x12d   : > { %vm4300_vm2 = vmmov %vm4286_vm10 }
 0x12e   : > { %vm4301_vm13 = vmmov %vm4300_vm2 }
 0x12f   : > { %vm4302_vm14 = vmmov %vm4298_vm7 }
 0x161   : > { %v923_v15 = vpop.f32.mrf.mxu2 }
 0x162   : > { %v3452_v59 = vmax.f32 %v923_v15, 0.0 }
 0x163   : > { %v946_v29 = vpop.f32.mrf.mxu3 }
 0x164   : > { %4276 = vst [vmem:[#allocation9_spill] sm:$0xff] %v3452_v59  ;;  %v3454_v62 = vmax.f32 %v946_v29, 0.0  ;;  %1346 = vmatmul.f32.vlgmr.msrb.gmra.mxu2 %v3452_v59 }
 0x166   : > { %4277 = vst [vmem:[#allocation10_spill] sm:$0xff] %v3454_v62  ;;  %1369 = vmatmul.f32.vlgmr.msrb.gmra.mxu3 %v3454_v62 }
 0x169   : > { %v926_v40 = vpop.f32.mrf.mxu2 }
 0x16a   : > { %v877_v38 = vpop.f32.mrf.mxu0  ;;  %v3462_v43 = vmax.f32 %v926_v40, 0.0 }
 0x16b   : > { %v3458_v44 = vmax.f32 %v877_v38, 0.0 }
 0x16c   : > { %4278 = vst [vmem:[#allocation11_spill] sm:$0xff] %v3462_v43  ;;  %v949_v4 = vpop.f32.mrf.mxu3  ;;  %1349 = vmatmul.f32.gmra.mxu2 %v3462_v43 }
 0x16d   : > { %v900_v32 = vpop.f32.mrf.mxu1  ;;  %1652 = vrot.lane.b32.xlu2 %v3458_v44, %s2405_s13  ;;  %1684 = vrot.lane.b32.xlu0 %v3458_v44, %s2406_s14  ;;  %v3471_v47 = vmax.f32 %v949_v4, 0.0 }
 0x16e   : > { %v3460_v11 = vmax.f32 %v900_v32, 0.0  ;;  %1300 = vmatmul.f32.vlgmr.msrb.gmra.mxu0 %v3458_v44 }
 0x16f   : > { %4279 = vst [vmem:[#allocation12_spill] sm:$0xff] %v3471_v47  ;;  %1372 = vmatmul.f32.gmra.mxu3 %v3471_v47 }
 0x170   : > { %1688 = vrot.lane.b32.xlu1 %v3460_v11, %s2406_s14  ;;  %1323 = vmatmul.f32.vlgmr.msrb.gmra.mxu1 %v3460_v11 }
 0x173   : > { %v880_v26 = vpop.f32.mrf.mxu0 }
 0x174   : > { %v3476_v13 = vmax.f32 %v880_v26, 0.0  ;;  %v1376_v26 = vld [vmem:[%s4152_s4] sm:$0xff] }
 0x175   : > { %1556 = vrot.lane.b32.xlu2 %v3458_v44, %s2402_s10  ;;  %1656 = vrot.lane.b32.xlu0 %v3460_v11, %s2405_s13 }
 0x176   : > { %v903_v12 = vpop.f32.mrf.mxu1  ;;  %1303 = vmatmul.f32.gmra.mxu0 %v3476_v13 }
 0x177   : > { %v3478_v54 = vmax.f32 %v903_v12, 0.0 }
 0x178   : > { %1624 = vrot.lane.b32.xlu1 %v3460_v11, %s2404_s12 }
 0x179   : > { %1326 = vmatmul.f32.gmra.mxu1 %v3478_v54 }
 0x17d   : > { %1560 = vrot.lane.b32.xlu2 %v3460_v11, %s2402_s10  ;;  %1620 = vrot.lane.b32.xlu0 %v3458_v44, %s2404_s12 }
 0x180   : > { %1588 = vrot.lane.b32.xlu1 %v3458_v44, %s2403_s11 }
 0x185   : > { %1600 = vrot.lane.b32.xlu2 %v3454_v62, %s2403_s11  ;;  %1524 = vrot.lane.b32.xlu0 %v3458_v44, %s2401_s9 }
 0x188   : > { %1492 = vrot.lane.b32.xlu1 %v3458_v44, %s2400_s8 }
 0x18d   : > { %1504 = vrot.lane.b32.xlu2 %v3454_v62, %s2400_s8  ;;  %1716 = vrot.lane.b32.xlu0 %v3458_v44, %s2407_s15 }
 0x190   : > { %1720 = vrot.lane.b32.xlu1 %v3460_v11, %s2407_s15 }
 0x195   : > { %1724 = vrot.lane.b32.xlu2 %v3452_v59, %s2407_s15  ;;  %1592 = vrot.lane.b32.xlu0 %v3460_v11, %s2403_s11 }
 0x198   : > { %1536 = vrot.lane.b32.xlu1 %v3454_v62, %s2401_s9 }
 0x19d   : > { %1632 = vrot.lane.b32.xlu2 %v3454_v62, %s2404_s12  ;;  %1568 = vrot.lane.b32.xlu0 %v3454_v62, %s2402_s10 }
 0x1a0   : > { %1692 = vrot.lane.b32.xlu1 %v3452_v59, %s2406_s14 }
 0x1a5   : > { %1660 = vrot.lane.b32.xlu0 %v3452_v59, %s2405_s13  ;;  %1686 = vrot.lane.b32.xlu2 %v3476_v13, %s2406_s14 }
 0x1a8   : > { %1628 = vrot.lane.b32.xlu1 %v3452_v59, %s2404_s12 }
 0x1ad   : > { %1696 = vrot.lane.b32.xlu0 %v3454_v62, %s2406_s14  ;;  %1658 = vrot.lane.b32.xlu2 %v3478_v54, %s2405_s13 }
 0x1b0   : > { %1654 = vrot.lane.b32.xlu1 %v3476_v13, %s2405_s13 }
 0x1b5   : > { %1664 = vrot.lane.b32.xlu0 %v3454_v62, %s2405_s13  ;;  %1626 = vrot.lane.b32.xlu2 %v3478_v54, %s2404_s12 }
 0x1b8   : > { %1622 = vrot.lane.b32.xlu1 %v3476_v13, %s2404_s12 }
 0x1bd   : > { %1728 = vrot.lane.b32.xlu0 %v3454_v62, %s2407_s15  ;;  %1590 = vrot.lane.b32.xlu2 %v3476_v13, %s2403_s11 }
 0x1c0   : > { %1526 = vrot.lane.b32.xlu1 %v3476_v13, %s2401_s9 }
 0x1c5   : > { %1690 = vrot.lane.b32.xlu0 %v3478_v54, %s2406_s14  ;;  %1494 = vrot.lane.b32.xlu2 %v3476_v13, %s2400_s8 }
 0x1c7   : > { %v3548_v30 = vpop.permute.xlu2 %1652 }
 0x1c8   : > { %1718 = vrot.lane.b32.xlu1 %v3476_v13, %s2407_s15 }
 0x1cd   : > { %1558 = vrot.lane.b32.xlu0 %v3476_v13, %s2402_s10  ;;  %1722 = vrot.lane.b32.xlu2 %v3478_v54, %s2407_s15 }
 0x1cf   : > { %v3556_v10 = vpop.permute.xlu2 %1556 }
 0x1d0   : > { %1594 = vrot.lane.b32.xlu1 %v3478_v54, %s2403_s11 }
 0x1d5   : > { %1602 = vrot.lane.b32.xlu0 %v3471_v47, %s2403_s11  ;;  %1530 = vrot.lane.b32.xlu2 %v3478_v54, %s2401_s9 }
 0x1d7   : > { %v3564_v23 = vpop.permute.xlu2 %1560 }
 0x1d8   : > { %1562 = vrot.lane.b32.xlu1 %v3478_v54, %s2402_s10 }
 0x1dd   : > { %1506 = vrot.lane.b32.xlu0 %v3471_v47, %s2400_s8  ;;  %1538 = vrot.lane.b32.xlu2 %v3471_v47, %s2401_s9 }
 0x1df   : > { %v3580_v34 = vpop.permute.xlu2 %1600  ;;  %v3582_v42 = vpop.permute.xlu0 %1684 }
 0x1e0   : > { %1570 = vrot.lane.b32.xlu1 %v3471_v47, %s2402_s10 }
 0x1e2   : > { %v3578_v49 = vpop.permute.xlu1 %1688 }
 0x1e3   : > { %v3588_v33 = vsel %vm4283_vm3, %v3582_v42, %v3578_v49  ;;  %vm4303_vm3 = vmmov %vm4290_vm0 }
 0x1e5   : > { %1694 = vrot.lane.b32.xlu0 %v3462_v43, %s2406_s14  ;;  %1662 = vrot.lane.b32.xlu2 %v3462_v43, %s2405_s13 }
 0x1e7   : > { %v3598_v5 = vpop.permute.xlu2 %1504  ;;  %v3600_v20 = vpop.permute.xlu0 %1656 }
 0x1e8   : > { %1596 = vrot.lane.b32.xlu1 %v3452_v59, %s2403_s11  ;;  %v1347_v36 = vpop.f32.mrf.mxu2 }
 0x1e9   : > { %v1370_v17 = vpop.f32.mrf.mxu3 }
 0x1ea   : > { %v3596_v27 = vpop.permute.xlu1 %1624 }
 0x1eb   : > { %v1301_v50 = vpop.f32.mrf.mxu0 }
 0x1ed   : > { %v1324_v22 = vpop.f32.mrf.mxu1  ;;  %1726 = vrot.lane.b32.xlu0 %v3462_v43, %s2407_s15  ;;  %1630 = vrot.lane.b32.xlu2 %v3462_v43, %s2404_s12 }
 0x1ee   : > { %v1325_v41 = vadd.f32 %v1324_v22, %v1301_v50 }
 0x1ef   : > { %v3610_v21 = vpop.permute.xlu2 %1724  ;;  %v1621_v7 = vpop.permute.xlu0 %1620 }
 0x1f0   : > { %1698 = vrot.lane.b32.xlu1 %v3471_v47, %s2406_s14  ;;  %v3615_v45 = vsel %vm4284_vm8, %v1621_v7, %v3596_v27  ;;  %v1350_v46 = vpop.f32.mrf.mxu2  ;;  %v1348_v19 = vadd.f32 %v1347_v36, %v1325_v41  ;;  %vm4304_vm8 = vmmov %vm4298_vm7 }
 0x1f2   : > { %v3608_v3 = vpop.permute.xlu1 %1588  ;;  %v1373_v35 = vpop.f32.mrf.mxu3  ;;  %v1371_v4 = vadd.f32 %v1370_v17, %v1348_v19  ;;  %v1377_v17 = vld [vmem:[%s4152_s4 + $0x8] sm:$0xff] }
 0x1f3   : > { %v1304_v2 = vpop.f32.mrf.mxu0 }
 0x1f5   : > { %1564 = vrot.lane.b32.xlu0 %v3452_v59, %s2402_s10  ;;  %1666 = vrot.lane.b32.xlu2 %v3471_v47, %s2405_s13  ;;  %s285_s13 = scalar_lea.vmem %s4154_s6, %s4390_s26 }
 0x1f6   : > { %v1327_v0 = vpop.f32.mrf.mxu1 }
 0x1f7   : > { %v1328_v56 = vadd.f32 %v1327_v0, %v1304_v2  ;;  %v1633_v29 = vpop.permute.xlu2 %1632  ;;  %v3625_v38 = vpop.permute.xlu0 %1524 }
 0x1f8   : > { %1730 = vrot.lane.b32.xlu1 %v3471_v47, %s2407_s15  ;;  %v3629_v40 = vsel %vm4285_vm6, %v1633_v29, %v1621_v7  ;;  %v1383_v7 = vld [vmem:[%s4152_s4 + $0x38] sm:$0xff]  ;;  %vm4305_vm6 = vmmov %vm4291_vm4 }
 0x1f9   : > { %v1351_v63 = vadd.f32 %v1350_v46, %v1328_v56  ;;  %v1378_v46 = vld [vmem:[%s4152_s4 + $0x10] sm:$0xff] }
 0x1fa   : > { %v3623_v15 = vpop.permute.xlu1 %1492 }
 0x1fb   : > { %v1374_v32 = vadd.f32 %v1373_v35, %v1351_v63 }
 0x1fd   : > { %1426 = vmatpush.msra.mxu0 %v1374_v32  ;;  %2355 = vmatpush.msra.mxu3 %v1374_v32  ;;  %v1379_v32 = vld [vmem:[%s4152_s4 + $0x18] sm:$0xff] }
 0x1fe   : > { %1598 = vrot.lane.b32.xlu0 %v3462_v43, %s2403_s11  ;;  %1634 = vrot.lane.b32.xlu2 %v3471_v47, %s2404_s12 }
 0x1ff   : > { %1427 = vmatpush.msra.mxu0 %v1371_v4  ;;  %2356 = vmatpush.msra.mxu3 %v1371_v4  ;;  %v3646_v36 = vpop.permute.xlu0 %1716  ;;  %v3648_v50 = vpop.permute.xlu2 %1686 }
 0x200   : > { %2318 = vmatmul.msk.f32.vlgmr.msra.gmra.mxu0 %vm1384_vm9, %v1376_v26  ;;  %1498 = vrot.lane.b32.xlu1 %v3478_v54, %s2400_s8 }
 0x201   : > { %2328 = vmatpush.msk.msrb.mxu3 %vm4288_vm1, %v4173_v48 }
 0x202   : > { %v1721_v12 = vpop.permute.xlu1 %1720  ;;  %2325 = vmatmul.msk.f32.vlgmr.msra.gmra.mxu3 %vm1384_vm9, %v1383_v7 }
 0x203   : > { %v3644_v22 = vsel %vm4286_vm10, %v1721_v12, %v3610_v21  ;;  %vm4306_vm10 = vcmp.lt.s32.totalorder %v2533_v37, 1 }
 0x204   : > { %4287 = vst [vmem:[#allocation13_spill] sm:$0xff] %v3644_v22  ;;  %vm4307_vm1 = vmmov %vm4306_vm10 }
 0x206   : > { %1566 = vrot.lane.b32.xlu0 %v3462_v43, %s2402_s10  ;;  %1528 = vrot.lane.b32.xlu2 %v3460_v11, %s2401_s9  ;;  %s2212_s10 = sshll.u32 %s4392_s25, 2 }
 0x207   : > { %v3667_v41 = vpop.permute.xlu0 %1592  ;;  %v3669_v2 = vpop.permute.xlu2 %1658 }
 0x208   : > { %2319 = vmatmul.msk.f32.gmra.mxu0 %vm1384_vm9, %v1377_v17  ;;  %1496 = vrot.lane.b32.xlu1 %v3460_v11, %s2400_s8 }
 0x20a   : > { %v3665_v0 = vpop.permute.xlu1 %1536 }
 0x20b   : > { %4289 = vst [vmem:[#allocation14_spill] sm:$0xff] %v3665_v0 }
 0x20e   : > { %1502 = vrot.lane.b32.xlu0 %v3462_v43, %s2400_s8  ;;  %1534 = vrot.lane.b32.xlu2 %v3462_v43, %s2401_s9 }
 0x20f   : > { %v3687_v19 = vpop.permute.xlu0 %1568  ;;  %v3689_v63 = vpop.permute.xlu2 %1626 }
 0x210   : > { %2320 = vmatmul.msk.f32.gmra.mxu0 %vm1384_vm9, %v1378_v46  ;;  %1532 = vrot.lane.b32.xlu1 %v3452_v59, %s2401_s9 }
 0x212   : > { %v1693_v56 = vpop.permute.xlu1 %1692 }
 0x213   : > { %v3685_v35 = vsel %vm4290_vm0, %v3578_v49, %v1693_v56  ;;  %vm4309_vm0 = vcmp.lt.s32.totalorder %v2533_v37, 15 }
 0x216   : > { %1500 = vrot.lane.b32.xlu2 %v3452_v59, %s2400_s8  ;;  %s290_s8 = scalar_lea.vmem %s4155_s7, %s2212_s10 }
 0x217   : > { %v1661_v17 = vpop.permute.xlu0 %1660  ;;  %v3706_v7 = vpop.permute.xlu2 %1590 }
 0x218   : > { %2321 = vmatmul.msk.f32.gmra.mxu0 %vm1384_vm9, %v1379_v32  ;;  %v3711_v46 = vsel %vm4294_vm12, %v3600_v20, %v1661_v17  ;;  %v1380_v32 = vld [vmem:[%s4152_s4 + $0x20] sm:$0xff]  ;;  %vm4313_vm12 = vcmp.lt.s32.totalorder %v2533_v37, 16 }
 0x21a   : > { %v1629_v4 = vpop.permute.xlu1 %1628 }
 0x21b   : > { %v3699_v26 = vsel %vm4291_vm4, %v1629_v4, %v1633_v29  ;;  %v3704_v49 = vsel %vm4293_vm15, %v3596_v27, %v1629_v4  ;;  %vm4310_vm4 = vmmov %vm4309_vm0 }
 0x21c   : > { %4292 = vst [vmem:[#allocation15_spill] sm:$0xff] %v3699_v26  ;;  %vm4311_vm15 = vmmov %vm4298_vm7 }
 0x21f   : > { %v1697_v48 = vpop.permute.xlu0 %1696  ;;  %v3719_v58 = vpop.permute.xlu2 %1494 }
 0x220   : > { %2322 = vmatmul.msk.f32.gmra.mxu0 %vm1384_vm9, %v1380_v32  ;;  %v3724_v27 = vsel %vm4295_vm11, %v1697_v48, %v3582_v42  ;;  %v3728_v4 = vsel %vm4296_vm5, %v1693_v56, %v1697_v48  ;;  %v1382_v48 = vld [vmem:[%s4152_s4 + $0x30] sm:$0xff]  ;;  %vm4314_vm11 = vmmov %vm4313_vm12  ;;  %vm4315_vm5 = vcmp.lt.s32.totalorder %v2533_v37, 17 }
 0x221   : > { %4297 = vst [vmem:[#allocation16_spill] sm:$0xff] %v3728_v4  ;;  %v1736_v4 = vsel %vm4300_vm2, %v3646_v36, %v1721_v12  ;;  %v1672_v12 = vsel %vm4304_vm8, %v3548_v30, %v3600_v20  ;;  %vm4317_vm2 = vmmov %vm4303_vm3 }
 0x222   : > { %v3717_v29 = vpop.permute.xlu1 %1654  ;;  %v1740_v8 = vmul.f32 %v2728_v1, %v1736_v4 }
 0x227   : > { %v3736_v51 = vpop.permute.xlu0 %1664  ;;  %v3738_v59 = vpop.permute.xlu2 %1722 }
 0x228   : > { %2323 = vmatmul.msk.f32.gmra.mxu0 %vm1384_vm9, %v1381_v53  ;;  %v3743_v42 = vsel %vm4298_vm7, %v1661_v17, %v3736_v51  ;;  %vm4316_vm7 = vmmov %vm4315_vm5 }
 0x229   : > { %4299 = vst [vmem:[#allocation17_spill] sm:$0xff] %v3743_v42 }
 0x22a   : > { %v3734_v32 = vpop.permute.xlu1 %1622 }
 0x22b   : > { %v1641_v47 = vsel %vm4305_vm6, %v3734_v32, %v3689_v63 }
 0x22c   : > { %v1648_v20 = vmul.f32 %v2728_v1, %v1641_v47  ;;  %v1610_v47 = vsel %vm4306_vm10, %v3580_v34, %v3608_v3  ;;  %vm4324_vm10 = vmmov %vm4317_vm2 }
 0x22f   : > { %v3751_v53 = vpop.permute.xlu0 %1728  ;;  %v3753_v43 = vpop.permute.xlu2 %1530 }
 0x230   : > { %2324 = vmatmul.msk.f32.gmra.mxu0 %vm1384_vm9, %v1382_v48  ;;  %v1673_v48 = vsel %vm4302_vm14, %v3717_v29, %v3669_v2  ;;  %vm4319_vm14 = vmmov %vm4304_vm8 }
 0x231   : > { %v1680_v62 = vmul.f32 %v2819_v16, %v1673_v48  ;;  %vm4322_vm8 = vmmov %vm4305_vm6 }
 0x232   : > { %v3749_v56 = vpop.permute.xlu1 %1526 }
 0x237   : > { %v1691_v17 = vpop.permute.xlu0 %1690  ;;  %v3764_v39 = vpop.permute.xlu2 %1538 }
 0x238   : > { %v1705_v22 = vsel %vm4303_vm3, %v3648_v50, %v1691_v17  ;;  %vm4321_vm3 = vcmask 1040384  }
 0x239   : > { %1754 = vmatpush.msra.mxu2 %v1705_v22  ;;  %v1676_v22 = vmul.f32 %v2819_v16, %v1672_v12 }
 0x23a   : > { %v3755_v26 = vpop.permute.xlu1 %1718 }
 0x23b   : > { %v1737_v42 = vsel %vm4301_vm13, %v3755_v26, %v3738_v59  ;;  %1755 = vmatpush.msra.mxu2 %v3588_v33  ;;  %v1644_v33 = vmul.f32 %v2728_v1, %v3615_v45  ;;  %vm4318_vm13 = vmmov %vm4305_vm6 }
 0x23c   : > { %v1744_v52 = vmul.f32 %v2728_v1, %v1737_v42  ;;  %vm4323_vm6 = vmmov %vm4317_vm2 }
 0x23d   : > { %1756 = vmatpush.msra.mxu2 %v1680_v62 }
 0x23e   : > { %1791 = vmatpush.msrb.mxu3 %v1744_v52 }
 0x23f   : > { %v3789_v25 = vpop.permute.xlu0 %1558  ;;  %1757 = vmatpush.msra.mxu2 %v1676_v22  ;;  %v1663_v52 = vpop.permute.xlu2 %1662 }
 0x240   : > { %1792 = vmatpush.msrb.mxu3 %v1740_v8 }
 0x241   : > { %1758 = vmatpush.msra.mxu2 %v1648_v20 }
 0x242   : > { %v3786_v42 = vpop.permute.xlu1 %1594 }
 0x243   : > { %1759 = vmatpush.msra.mxu2 %v1644_v33 }
 0x245   : > { %1760 = vmatpush.msra.mxu2 %v3476_v13  ;;  %v1612_v13 = vmul.f32 %v2819_v16, %v1610_v47  ;;  %v1547_v47 = vsel %vm4313_vm12, %v3764_v39, %v3749_v56  ;;  %vm4329_vm12 = vcmp.lt.s32.totalorder %v2533_v37, 1 }
 0x247   : > { %v3796_v8 = vpop.permute.xlu0 %1602  ;;  %1761 = vmatpush.msra.mxu2 %v3458_v44  ;;  %v1631_v62 = vpop.permute.xlu2 %1630  ;;  %v1578_v44 = vsel %vm4309_vm0, %v3687_v19, %v3556_v10  ;;  %vm4326_vm0 = vmmov %vm4319_vm14 }
 0x248   : > { %v1611_v1 = vsel %vm4307_vm1, %v3796_v8, %v3706_v7  ;;  %vm4325_vm1 = vcmp.lt.s32.totalorder %v2533_v37, 111 }
 0x249   : > { %v1616_v45 = vmul.f32 %v2819_v16, %v1611_v1  ;;  %v1580_v1 = vmul.f32 %v2734_v9, %v1578_v44 }
 0x24a   : > { %v3794_v4 = vpop.permute.xlu1 %1562 }
 0x24b   : > { %1762 = vmatpush.msra.mxu2 %v1616_v45  ;;  %v1546_v45 = vsel %vm4314_vm11, %v3665_v0, %v3625_v38  ;;  %vm4330_vm11 = vmmov %vm4325_vm1 }
 0x24d   : > { %1763 = vmatpush.msra.mxu2 %v1612_v13  ;;  %v1552_v13 = vmul.f32 %v2843_v28, %v1547_v47 }
 0x24f   : > { %v3815_v12 = vpop.permute.xlu0 %1506  ;;  %v1667_v20 = vpop.permute.xlu2 %1666 }
 0x250   : > { %v3824_v16 = vsel %vm4311_vm15, %v1663_v52, %v1667_v20  ;;  %vm4328_vm15 = vmmov %vm4322_vm8 }
 0x251   : > { %4312 = vst [vmem:[#allocation19_spill] sm:$0xff] %v3824_v16  ;;  %v1548_v16 = vmul.f32 %v2843_v28, %v1546_v45 }
 0x252   : > { %v3809_v48 = vpop.permute.xlu1 %1570 }
 0x253   : > { %4308 = vst [vmem:[#allocation18_spill] sm:$0xff] %v3809_v48  ;;  %v1579_v22 = vsel %vm4310_vm4, %v3809_v48, %v3789_v25  ;;  %vm4327_vm4 = vmmov %vm4326_vm0 }
 0x254   : > { %v1584_v33 = vmul.f32 %v2734_v9, %v1579_v22  ;;  %v1515_v22 = vsel %vm4315_vm5, %v3815_v12, %v3719_v58  ;;  %v1514_v9 = vsel %vm4316_vm7, %v3598_v5, %v3623_v15  ;;  %vm4331_vm5 = vmmov %vm4325_vm1 }
 0x255   : > { %v1516_v45 = vmul.f32 %v2879_v24, %v1514_v9  ;;  %vm4332_vm7 = vmmov %vm4329_vm12 }
 0x256   : > { %1764 = vmatpush.msra.mxu2 %v1584_v33  ;;  %v1520_v33 = vmul.f32 %v2879_v24, %v1515_v22  ;;  %v1709_v22 = vmul.f32 %v2876_v57, %v3685_v35  ;;  %v1639_v24 = vsel %vm4322_vm8, %v3689_v63, %v1631_v62  ;;  %vm4337_vm8 = vmmov %vm4325_vm1 }
 0x257   : > { %v1695_v44 = vpop.permute.xlu0 %1694 }
 0x258   : > { %1765 = vmatpush.msra.mxu2 %v1580_v1  ;;  %v1703_v47 = vsel %vm4317_vm2, %v1691_v17, %v1695_v44  ;;  %v1635_v1 = vpop.permute.xlu2 %1634  ;;  %v3864_v17 = vld [vmem:[%s4150_s2] sm:$0xff]  ;;  %vm4333_vm2 = vcmp.lt.s32.totalorder %v2533_v37, 16 }
 0x259   : > { %v1713_v0 = vmul.f32 %v2876_v57, %v1703_v47  ;;  %v3853_v28 = vsel %vm4318_vm13, %v1631_v62, %v1635_v1  ;;  %v4320_v47 = vmov 1.0   ;;  %v1677_v57 = vmul.f32 %v2828_v18, %v3711_v46 }
 0x25a   : > { %v3841_v48 = vpop.permute.xlu1 %1596  ;;  %1766 = vmatpush.msra.mxu2 %v1552_v13  ;;  %v1671_v13 = vsel %vm4319_vm14, %v3669_v2, %v1663_v52  ;;  %v1675_v46 = vsel %vm4326_vm0, %v1667_v20, %v3717_v29  ;;  %v1643_v29 = vsel %vm4328_vm15, %v1635_v1, %v3734_v32  ;;  %vm4334_vm13 = vcmp.lt.s32.totalorder %v2533_v37, 15  ;;  %vm4335_vm14 = vmmov %vm4325_vm1 }
 0x25b   : > { %1800 = vmatpush.msra.mxu3 %v1713_v0  ;;  %vm4347_vm15 = vmmov %vm4333_vm2 }
 0x25c   : > { %1767 = vmatpush.msra.mxu2 %v1548_v16  ;;  %v1681_v16 = vmul.f32 %v2828_v18, %v1671_v13  ;;  %v1649_v18 = vmul.f32 %v2713_v60, %v1639_v24  ;;  %v1577_v13 = vsel %vm4334_vm13, %v3789_v25, %v3794_v4  ;;  %v1738_v25 = vsel %vm4337_vm8, %v3751_v53, %v3646_v36 }
 0x25d   : > { %1801 = vmatpush.msra.mxu3 %v1709_v22 }
 0x25e   : > { %1768 = vmatpush.msra.mxu2 %v1520_v33  ;;  %v1683_v33 = vmul.f32 %v2763_v31, %v1675_v46 }
 0x25f   : > { %v1727_v0 = vpop.permute.xlu0 %1726  ;;  %1802 = vmatpush.msra.mxu3 %v1681_v16  ;;  %v1585_v16 = vmul.f32 %v2713_v60, %v1577_v13 }
 0x260   : > { %1769 = vmatpush.msra.mxu2 %v1516_v45  ;;  %v3885_v63 = vsel %vm4325_vm1, %v3738_v59, %v1727_v0  ;;  %v3888_v9 = vpop.permute.xlu2 %1528  ;;  %v1674_v59 = vsel %vm4327_vm4, %v3736_v51, %v3548_v30  ;;  %v1732_v51 = vsel %vm4330_vm11, %v3610_v21, %v3751_v53  ;;  %v1647_v21 = vmul.f32 %v2614_v6, %v3629_v40  ;;  %vm4342_vm1 = vmmov %vm4332_vm7 }
 0x261   : > { %1770 = vmatmul.f32.vlgmr.msra.gmra.mxu2 %v3864_v17  ;;  %1803 = vmatpush.msra.mxu3 %v1677_v57  ;;  %vm4343_vm0 = vmmov %vm4342_vm1  ;;  %vm4346_vm4 = vcmp.lt.s32.totalorder %v2533_v37, 17 }
 0x262   : > { %2334 = vmatpush.msk.msrb.mxu2 %vm4321_vm3, %v4320_v47  ;;  %v1699_v2 = vpop.permute.xlu1 %1698  ;;  %vm4336_vm3 = vmmov %vm4334_vm13 }
 0x263   : > { %v3877_v35 = vsel %vm4323_vm6, %v1695_v44, %v1699_v2  ;;  %v1707_v52 = vsel %vm4324_vm10, %v1699_v2, %v3648_v50  ;;  %v1711_v50 = vmul.f32 %v2834_v61, %v3724_v27  ;;  %v1645_v44 = vmul.f32 %v2713_v60, %v3704_v49  ;;  %1804 = vmatpush.msra.mxu3 %v1649_v18  ;;  %v4340_v2 = vld [vmem:[#allocation12_spill] sm:$0xff]  ;;  %vm4341_vm10 = vmmov %vm4332_vm7  ;;  %v4345_v18 = vld [vmem:[#allocation5_spill] sm:$0xff] }
 0x264   : > { %v1715_v62 = vmul.f32 %v2834_v61, %v1707_v52  ;;  %v1679_v61 = vmul.f32 %v2763_v31, %v1674_v59  ;;  %v1609_v49 = vsel %vm4329_vm12, %v3706_v7, %v3786_v42  ;;  %v1608_v31 = vsel %vm4332_vm7, %v3608_v3, %v3667_v41  ;;  %vm4348_vm12 = vmmov %vm4333_vm2  ;;  %v4350_v59 = vld [vmem:[#allocation18_spill] sm:$0xff] }
 0x265   : > { %1805 = vmatpush.msra.mxu3 %v1645_v44  ;;  %v1651_v7 = vmul.f32 %v2614_v6, %v1643_v29  ;;  %v1617_v45 = vmul.f32 %v2814_v14, %v1609_v49  ;;  %v1742_v3 = vmul.f32 %v2704_v55, %v1732_v51  ;;  %v1613_v22 = vmul.f32 %v2814_v14, %v1608_v31  ;;  %vm4349_vm11 = vmmov %vm4336_vm3 }
 0x266   : > { %1892 = vmatpush.msrb.mxu0 %v1715_v62  ;;  %vm4339_vm6 = vcmask 1040384   ;;  %v1604_v36 = vsel %vm4341_vm10, %v3841_v48, %v3580_v34  ;;  %v4344_v62 = vld [vmem:[#allocation10_spill] sm:$0xff]  ;;  %v1545_v34 = vsel %vm4347_vm15, %v3749_v56, %v3753_v43  ;;  %vm4352_vm7 = vmmov %vm4336_vm3  ;;  %vm1462_vm15 = vcmask 531456  }
 0x267   : > { %v3915_v30 = vpop.permute.xlu0 %1564  ;;  %1806 = vmatpush.msra.mxu3 %v3478_v54  ;;  %vm4359_vm10 = vmmov %vm4348_vm12 }
 0x268   : > { %1893 = vmatpush.msrb.mxu0 %v1711_v50  ;;  %v1535_v1 = vpop.permute.xlu2 %1534 }
 0x269   : > { %v3932_v54 = vsel %vm4333_vm2, %v3753_v43, %v1535_v1  ;;  %1807 = vmatpush.msra.mxu3 %v3460_v11  ;;  %v1576_v11 = vsel %vm4336_vm3, %v3556_v10, %v3564_v23  ;;  %v1572_v43 = vsel %vm4349_vm11, %v3915_v30, %v3687_v19  ;;  %vm4353_vm2 = vmmov %vm4346_vm4  ;;  %vm4373_vm11 = vcmp.lt.s32.totalorder %v2533_v37, 1 }
 0x26a   : > { %v1731_v27 = vpop.permute.xlu1 %1730  ;;  %1894 = vmatpush.msrb.mxu0 %v1683_v33  ;;  %v1581_v57 = vmul.f32 %v2713_v60, %v1576_v11  ;;  %vm4354_vm13 = vmmov %vm4353_vm2 }
 0x26b   : > { %v1733_v32 = vsel %vm4331_vm5, %v1727_v0, %v1731_v27  ;;  %v1739_v40 = vsel %vm4335_vm14, %v1731_v27, %v3755_v26  ;;  %1808 = vmatpush.msra.mxu3 %v1617_v45  ;;  %v4338_v26 = vld [vmem:[#allocation8_spill] sm:$0xff]  ;;  %vm4351_vm5 = vmmov %vm4336_vm3  ;;  %v1489_v45 = vld [vmem:[%s4150_s2 + $0x8] sm:$0xff] }
 0x26c   : > { %v1746_v20 = vmul.f32 %v2704_v55, %v1733_v32  ;;  %1895 = vmatpush.msrb.mxu0 %v1679_v61  ;;  %v1747_v24 = vmul.f32 %v4338_v26, %v1739_v40  ;;  %v1743_v0 = vmul.f32 %v4338_v26, %v1738_v25  ;;  %v1583_v32 = vmul.f32 %v2614_v6, %v1572_v43  ;;  %vm4355_vm14 = vmmov %vm4348_vm12  ;;  %v4041_v40 = vld [vmem:[%s4150_s2 + $0x10] sm:$0xff] }
 0x26d   : > { %1809 = vmatpush.msra.mxu3 %v1613_v22  ;;  %vm4356_vm3 = vmmov %vm4353_vm2  ;;  %1773 = vmatmul.f32.gmra.mxu2 %v4041_v40  ;;  %v1491_v22 = vld [vmem:[%s4150_s2 + $0x18] sm:$0xff] }
 0x26e   : > { %1883 = vmatpush.msrb.mxu2 %v1746_v20  ;;  %1896 = vmatpush.msrb.mxu0 %v1651_v7  ;;  %vm4357_vm8 = vmmov %vm4353_vm2 }
 0x26f   : > { %1810 = vmatpush.msra.mxu3 %v1585_v16 }
 0x270   : > { %1884 = vmatpush.msrb.mxu2 %v1742_v3  ;;  %1897 = vmatpush.msrb.mxu0 %v1647_v21  ;;  %v1599_v10 = vpop.permute.xlu0 %1598  ;;  %v1501_v56 = vpop.permute.xlu2 %1500 }
 0x271   : > { %v1605_v53 = vsel %vm4342_vm1, %v1599_v10, %v3796_v8  ;;  %v3969_v52 = vsel %vm4343_vm0, %v3786_v42, %v1599_v10  ;;  %1811 = vmatpush.msra.mxu3 %v1581_v57  ;;  %v1615_v8 = vmul.f32 %v4345_v18, %v1604_v36  ;;  %v1544_v42 = vsel %vm4348_vm12, %v3625_v38, %v3888_v9  ;;  %vm4361_vm1 = vmmov %vm4359_vm10 }
 0x272   : > { %2337 = vmatpush.msk.msra.mxu2 %vm4339_vm6, %v4320_v47  ;;  %1898 = vmatpush.msrb.mxu0 %v4340_v2  ;;  %v1499_v60 = vpop.permute.xlu1 %1498  ;;  %v1619_v46 = vmul.f32 %v4345_v18, %v1605_v53  ;;  %vm4358_vm6 = vmmov %vm4353_vm2  ;;  %vm4362_vm0 = vcmask 1040384  }
 0x273   : > { %v1513_v50 = vsel %vm4346_vm4, %v3719_v58, %v1499_v60  ;;  %1812 = vmatpush.msra.mxu3 %v1545_v34  ;;  %vm4363_vm4 = vmmov %vm4362_vm0  ;;  %v4367_v34 = vld [vmem:[#allocation19_spill] sm:$0xff] }
 0x274   : > { %1929 = vmatpush.msra.mxu2 %v1747_v24  ;;  %1899 = vmatpush.msrb.mxu0 %v4344_v62  ;;  %v1521_v44 = vmul.f32 %v2814_v14, %v1513_v50  ;;  %v4364_v62 = vld [vmem:[#allocation7_spill] sm:$0xff]  ;;  %vm4365_vm12 = vmmov %vm4362_vm0 }
 0x275   : > { %1813 = vmatpush.msra.mxu3 %v1544_v42  ;;  %2335 = vmatmul.msk.f32.vlgmr.msrb.gmra.mxu2 %vm1384_vm9, %v1489_v45 }
 0x276   : > { %1930 = vmatpush.msra.mxu2 %v1743_v0  ;;  %1900 = vmatpush.msrb.mxu0 %v1619_v46  ;;  %v4366_v46 = vld [vmem:[#allocation13_spill] sm:$0xff] }
 0x277   : > { %1814 = vmatpush.msra.mxu3 %v1521_v44  ;;  %v1741_v50 = vmul.f32 %v4364_v62, %v4366_v46  ;;  %v4369_v44 = vld [vmem:[#allocation16_spill] sm:$0xff] }
 0x278   : > { %1901 = vmatpush.msrb.mxu0 %v1615_v8  ;;  %v1567_v58 = vpop.permute.xlu0 %1566  ;;  %2329 = vmatmul.msk.f32.vlgmr.msrb.gmra.mxu3 %vm1384_vm9, %v1489_v45  ;;  %v4368_v8 = vld [vmem:[#allocation6_spill] sm:$0xff] }
 0x279   : > { %v1573_v33 = vsel %vm4351_vm5, %v1567_v58, %v4350_v59  ;;  %v3996_v38 = vsel %vm4352_vm7, %v3794_v4, %v1567_v58  ;;  %v1541_v4 = vsel %vm4355_vm14, %v1535_v1, %v3764_v39  ;;  %v4360_v1 = vld [vmem:[#allocation14_spill] sm:$0xff]  ;;  %2346 = vmatpush.msk.msrb.mxu2 %vm4363_vm4, %v4320_v47  ;;  %v1682_v42 = vmul.f32 %v4368_v8, %v4367_v34  ;;  %v4370_v58 = vld [vmem:[#allocation17_spill] sm:$0xff]  ;;  %vm4378_vm7 = vmmov %vm4362_vm0 }
 0x27a   : > { %v1497_v29 = vpop.permute.xlu1 %1496  ;;  %v1587_v61 = vmul.f32 %v2614_v6, %v1573_v33  ;;  %v1508_v6 = vsel %vm4358_vm6, %v1501_v56, %v3598_v5  ;;  %v1678_v43 = vmul.f32 %v4368_v8, %v4370_v58  ;;  %v1606_v33 = vsel %vm4373_vm11, %v3667_v41, %v3841_v48  ;;  %v4376_v48 = vld [vmem:[#allocation3_spill] sm:$0xff] }
 0x27b   : > { %v4001_v49 = vsel %vm4353_vm2, %v1497_v29, %v1501_v56  ;;  %v1512_v19 = vsel %vm4354_vm13, %v3623_v15, %v1497_v29  ;;  %v1519_v3 = vmul.f32 %v4345_v18, %v1508_v6  ;;  %v4371_v56 = vld [vmem:[#allocation15_spill] sm:$0xff]  ;;  %v1618_v29 = vmul.f32 %v4368_v8, %v3969_v52  ;;  %vm4379_vm2 = vmmov %vm4362_vm0  ;;  %v1946_v6 = vld [vmem:[%s4151_s3] sm:$0x1] }
 0x27c   : > { %v1517_v27 = vmul.f32 %v2814_v14, %v1512_v19  ;;  %1902 = vmatpush.msrb.mxu0 %v1587_v61  ;;  %v1646_v59 = vmul.f32 %v2704_v55, %v4371_v56  ;;  %v4374_v61 = vld [vmem:[#allocation9_spill] sm:$0xff]  ;;  %v4375_v19 = vld [vmem:[#allocation2_spill] sm:$0xff]  ;;  %v1554_v52 = vmul.f32 %v4376_v48, %v3932_v54  ;;  %vm1486_vm13 = vcmask 11264  }
 0x27d   : > { %v1429_v51 = vpop.f32.mrf.mxu0  ;;  %2336 = vmatmul.msk.f32.gmra.mxu2 %vm1384_vm9, %v1491_v22 }
 0x27e   : > { %1815 = vmatpush.msra.mxu3 %v1517_v27  ;;  %1903 = vmatpush.msrb.mxu0 %v1583_v32  ;;  %v1453_v53 = vmax.f32 %v1429_v51, 0.0  ;;  %v1586_v27 = vmul.f32 %v4375_v19, %v3996_v38  ;;  %v4377_v32 = vld [vmem:[#allocation4_spill] sm:$0xff] }
 0x27f   : > { %v1518_v37 = vmul.f32 %v4377_v32, %v4001_v49 }
 0x280   : > { %v1503_v31 = vpop.permute.xlu0 %1502  ;;  %1904 = vmatpush.msrb.mxu0 %v1541_v4  ;;  %2340 = vmatpush.msk.msrb.mxu3 %vm4362_vm0, %v4320_v47 }
 0x281   : > { %v1509_v7 = vsel %vm4356_vm3, %v1503_v31, %v3815_v12  ;;  %v4016_v15 = vsel %vm4357_vm8, %v1499_v60, %v1503_v31  ;;  %2330 = vmatmul.msk.f32.gmra.mxu3 %vm1384_vm9, %v1491_v22  ;;  %v1461_v60 = vld [vmem:[%s4153_s5] sm:$0xf] }
 0x282   : > { %v1533_v14 = vpop.permute.xlu1 %1532  ;;  %v1523_v20 = vmul.f32 %v4345_v18, %v1509_v7  ;;  %v1745_v18 = vmul.f32 %v4364_v62, %v3885_v63  ;;  %v1650_v63 = vmul.f32 %v2704_v55, %v3853_v28  ;;  %v1614_v28 = vmul.f32 %v4368_v8, %v1606_v33 }
 0x283   : > { %v4025_v39 = vsel %vm4359_vm10, %v3888_v9, %v1533_v14  ;;  %v1540_v12 = vsel %vm4361_vm1, %v1533_v14, %v4360_v1  ;;  %v1574_v55 = vsel %vm4351_vm5, %v3564_v23, %v3915_v30  ;;  %v1522_v4 = vmul.f32 %v4377_v32, %v4016_v15 }
 0x284   : > { %1905 = vmatpush.msrb.mxu0 %v1540_v12  ;;  %v1582_v41 = vmul.f32 %v4375_v19, %v1574_v55  ;;  %v1550_v51 = vmul.f32 %v4376_v48, %v4025_v39 }
 0x285   : > { %v1432_v21 = vpop.f32.mrf.mxu0  ;;  %v1450_v9 = vpop.f32.mrf.mxu3  ;;  %2338 = vmatmul.msk.f32.vlgmr.msra.gmra.mxu2 %vm1384_vm9, %v1489_v45 }
 0x286   : > { %1906 = vmatpush.msrb.mxu0 %v1523_v20  ;;  %v1460_v13 = vmax.f32 %v1450_v9, 0.0  ;;  %v1454_v36 = vmax.f32 %v1432_v21, 0.0 }
 0x288   : > { %1907 = vmatpush.msrb.mxu0 %v1519_v3  ;;  %1474 = vmatpush.msra.mxu1 %v1460_v13 }
 0x289   : > { %1908 = vmatmul.f32.vlgmr.msrb.gmra.mxu0 %v3864_v17  ;;  %1816 = vmatmul.f32.vlgmr.msra.gmra.mxu3 %v3864_v17 }
 0x28d   : > { %v1435_v5 = vpop.f32.mrf.mxu0  ;;  %2339 = vmatmul.msk.f32.gmra.mxu2 %vm1384_vm9, %v1491_v22 }
 0x28e   : > { %v1455_v0 = vmax.f32 %v1435_v5, 0.0 }
 0x291   : > { %1911 = vmatmul.f32.gmra.mxu0 %v4041_v40  ;;  %1819 = vmatmul.f32.gmra.mxu3 %v4041_v40 }
 0x295   : > { %v1438_v11 = vpop.f32.mrf.mxu0 }
 0x296   : > { %v1456_v10 = vmax.f32 %v1438_v11, 0.0 }
 0x29d   : > { %v1441_v25 = vpop.f32.mrf.mxu0 }
 0x29e   : > { %v1457_v57 = vmax.f32 %v1441_v25, 0.0 }
 0x2a5   : > { %v1444_v16 = vpop.f32.mrf.mxu0 }
 0x2a6   : > { %v1458_v2 = vmax.f32 %v1444_v16, 0.0 }
 0x2ad   : > { %v1447_v26 = vpop.f32.mrf.mxu0 }
 0x2ae   : > { %v1459_v24 = vmax.f32 %v1447_v26, 0.0 }
 0x2b0   : > { %1475 = vmatpush.msra.mxu1 %v1459_v24 }
 0x2b2   : > { %1476 = vmatpush.msra.mxu1 %v1458_v2 }
 0x2b4   : > { %1477 = vmatpush.msra.mxu1 %v1457_v57 }
 0x2b6   : > { %1478 = vmatpush.msra.mxu1 %v1456_v10 }
 0x2b8   : > { %1479 = vmatpush.msra.mxu1 %v1455_v0 }
 0x2ba   : > { %1480 = vmatpush.msra.mxu1 %v1454_v36 }
 0x2bc   : > { %1481 = vmatpush.msra.mxu1 %v1453_v53 }
 0x2bd   : > { %2327 = vmatmul.msk.f32.vlgmr.msra.gmra.mxu1 %vm1462_vm15, %v1461_v60 }
 0x2be   : > { %2331 = vmatpush.msk.msrb.mxu1 %vm4365_vm12, %v4320_v47 }
 0x2c0   : > { %1837 = vmatpush.msrb.mxu1 %v1745_v18 }
 0x2c2   : > { %1838 = vmatpush.msrb.mxu1 %v1741_v50 }
 0x2c4   : > { %1846 = vmatpush.msra.mxu1 %v3877_v35  ;;  %v4372_v35 = vld [vmem:[#allocation11_spill] sm:$0xff] }
 0x2c5   : > { %2332 = vmatmul.msk.f32.vlgmr.msrb.gmra.mxu1 %vm1384_vm9, %v1489_v45 }
 0x2c6   : > { %1847 = vmatpush.msra.mxu1 %v4369_v44 }
 0x2c8   : > { %1848 = vmatpush.msra.mxu1 %v1682_v42 }
 0x2ca   : > { %1849 = vmatpush.msra.mxu1 %v1678_v43 }
 0x2cc   : > { %1850 = vmatpush.msra.mxu1 %v1650_v63 }
 0x2cd   : > { %2333 = vmatmul.msk.f32.gmra.mxu1 %vm1384_vm9, %v1491_v22 }
 0x2ce   : > { %1851 = vmatpush.msra.mxu1 %v1646_v59 }
 0x2d0   : > { %1852 = vmatpush.msra.mxu1 %v4372_v35 }
 0x2d2   : > { %1853 = vmatpush.msra.mxu1 %v4374_v61 }
 0x2d4   : > { %1854 = vmatpush.msra.mxu1 %v1618_v29 }
 0x2d6   : > { %1855 = vmatpush.msra.mxu1 %v1614_v28 }
 0x2d8   : > { %1856 = vmatpush.msra.mxu1 %v1586_v27 }
 0x2da   : > { %1857 = vmatpush.msra.mxu1 %v1582_v41 }
 0x2dc   : > { %1858 = vmatpush.msra.mxu1 %v1554_v52 }
 0x2de   : > { %1859 = vmatpush.msra.mxu1 %v1550_v51 }
 0x2e0   : > { %1860 = vmatpush.msra.mxu1 %v1522_v4 }
 0x2e2   : > { %1861 = vmatpush.msra.mxu1 %v1518_v37 }
 0x2e3   : > { %1862 = vmatmul.f32.vlgmr.msra.gmra.mxu1 %v3864_v17 }
 0x2e4   : > { %2344 = vmatpush.msk.msrb.mxu1 %vm4378_vm7, %v4320_v47  ;;  %v1771_v23 = vpop.f32.mrf.mxu2 }
 0x2eb   : > { %1865 = vmatmul.f32.gmra.mxu1 %v4041_v40 }
 0x2f0   : > { %v1774_v54 = vpop.f32.mrf.mxu2 }
 0x2f8   : > { %v1886_v49 = vpop.f32.mrf.mxu2 }
 0x2fb   : > { %v1794_v30 = vpop.f32.mrf.mxu3 }
 0x2fc   : > { %v1795_v38 = vadd.f32 %v1794_v30, %v1771_v23 }
 0x2fe   : > { %v1938_v15 = vmax.f32 %v1795_v38, 0.0 }
 0x300   : > { %v1889_v17 = vpop.f32.mrf.mxu2 }
 0x304   : > { %v1797_v31 = vpop.f32.mrf.mxu3 }
 0x305   : > { %v1798_v7 = vadd.f32 %v1797_v31, %v1774_v54 }
 0x306   : > { %v1909_v20 = vpop.f32.mrf.mxu0 }
 0x307   : > { %v1942_v14 = vmax.f32 %v1798_v7, 0.0 }
 0x308   : > { %v1932_v39 = vpop.f32.mrf.mxu2 }
 0x309   : > { %1964 = vmatpush.msrb.mxu3 %v1942_v14  ;;  %v1933_v1 = vadd.f32 %v1932_v39, %v1909_v20 }
 0x30b   : > { %1965 = vmatpush.msrb.mxu3 %v1938_v15  ;;  %v1941_v3 = vmax.f32 %v1933_v1, 0.0 }
 0x30c   : > { %2341 = vmatmul.msk.f32.vlgmr.msrb.gmra.mxu3 %vm1384_vm9, %v1946_v6  ;;  %v1817_v9 = vpop.f32.mrf.mxu3 }
 0x30d   : > { %2342 = vmatpush.msk.msra.mxu3 %vm4379_vm2, %v4320_v47 }
 0x30e   : > { %v1912_v12 = vpop.f32.mrf.mxu0 }
 0x310   : > { %v1935_v21 = vpop.f32.mrf.mxu2 }
 0x311   : > { %v1936_v45 = vadd.f32 %v1935_v21, %v1912_v12 }
 0x313   : > { %v1945_v5 = vmax.f32 %v1936_v45, 0.0 }
 0x314   : > { %v1820_v40 = vpop.f32.mrf.mxu3 }
 0x315   : > { %2024 = vmatpush.msrb.mxu2 %v1945_v5 }
 0x317   : > { %2025 = vmatpush.msrb.mxu2 %v1941_v3 }
 0x318   : > { %2347 = vmatmul.msk.f32.vlgmr.msrb.gmra.mxu2 %vm1384_vm9, %v1946_v6 }
 0x33a   : > { %v1483_v47 = vpop.f32.mrf.mxu1 }
 0x33b   : > { %1487 = vst.msk [vmem:[%s290_s8] sm:$0xf] %vm1486_vm13, %v1483_v47 }
 0x342   : > { %v1840_v13 = vpop.f32.mrf.mxu1 }
 0x343   : > { %v1841_v22 = vadd.f32 %v1840_v13, %v1817_v9 }
 0x345   : > { %v1939_v16 = vmax.f32 %v1841_v22, 0.0 }
 0x34a   : > { %v1843_v11 = vpop.f32.mrf.mxu1 }
 0x34b   : > { %v1844_v25 = vadd.f32 %v1843_v11, %v1820_v40 }
 0x34d   : > { %v1943_v26 = vmax.f32 %v1844_v25, 0.0 }
 0x34f   : > { %1984 = vmatpush.msra.mxu3 %v1943_v26 }
 0x351   : > { %1985 = vmatpush.msra.mxu3 %v1939_v16 }
 0x352   : > { %2343 = vmatmul.msk.f32.vlgmr.msra.gmra.mxu3 %vm1384_vm9, %v1946_v6 }
 0x360   : > { %v1863_v24 = vpop.f32.mrf.mxu1 }
 0x361   : > { %v1887_v57 = vadd.f32 %v1886_v49, %v1863_v24 }
 0x363   : > { %v1940_v36 = vmax.f32 %v1887_v57, 0.0 }
 0x368   : > { %v1866_v2 = vpop.f32.mrf.mxu1 }
 0x369   : > { %v1890_v10 = vadd.f32 %v1889_v17, %v1866_v2 }
 0x36b   : > { %v1944_v0 = vmax.f32 %v1890_v10, 0.0 }
 0x36d   : > { %2004 = vmatpush.msrb.mxu1 %v1944_v0  ;;  %v4386_v0 = vlaneseq }
 0x36f   : > { %2005 = vmatpush.msrb.mxu1 %v1940_v36 }
 0x370   : > { %2345 = vmatmul.msk.f32.vlgmr.msrb.gmra.mxu1 %vm1384_vm9, %v1946_v6 }
 0x38f   : > { %v1967_v53 = vpop.f32.mrf.mxu3 }
 0x390   : > { %v2348_v50 = vmul.f32 -1.442695, %v1967_v53 }
 0x39b   : > { %v2027_v60 = vpop.f32.mrf.mxu2 }
 0x39c   : > { %v2351_v46 = vmul.f32 -1.442695, %v2027_v60 }
 0x3d5   : > { %v1987_v62 = vpop.f32.mrf.mxu3 }
 0x3d6   : > { %v2349_v18 = vmul.f32 -1.442695, %v1987_v62 }
 0x3d8   : > { %2376 = vpow2.f32 %v2349_v18 }
 0x3d9   : > { %2378 = vpow2.f32 %v2351_v46 }
 0x3da   : > { %2380 = vpow2.f32 %v2348_v50 }
 0x3de   : > { %v2377_v34 = vpop.eup %2376 }
 0x3df   : > { %v2379_v8 = vpop.eup %2378  ;;  %v2043_v44 = vadd.f32 1.0, %v2377_v34 }
 0x3e0   : > { %v2381_v42 = vpop.eup %2380  ;;  %v2045_v58 = vadd.f32 1.0, %v2379_v8 }
 0x3e1   : > { %v2042_v43 = vadd.f32 1.0, %v2381_v42  ;;  %2382 = vrcp.f32 %v2043_v44  ;;  %vm2066_vm9 = vweird.f32 %v2043_v44  ;;  %v2072_v4 = vand.u32 2147483648, %v2043_v44 }
 0x3e2   : > { %2384 = vrcp.f32 %v2045_v58  ;;  %v2070_v23 = vand.u32 2147483647, %v2043_v44  ;;  %vm2096_vm3 = vweird.f32 %v2045_v58  ;;  %v2100_v38 = vand.u32 2147483647, %v2045_v58 }
 0x3e3   : > { %2386 = vrcp.f32 %v2042_v43  ;;  %v2102_v31 = vand.u32 2147483648, %v2045_v58  ;;  %vm2051_vm10 = vweird.f32 %v2042_v43  ;;  %v2055_v14 = vand.u32 2147483647, %v2042_v43 }
 0x3e4   : > { %v2057_v49 = vand.u32 2147483648, %v2042_v43  ;;  %v2073_v17 = vor.u32 1.1754944e-38, %v2072_v4  ;;  %vm2071_vm4 = vcmp.eq.f32.partialorder %v2070_v23, 8.507059e+37  ;;  %vm2101_vm12 = vcmp.eq.f32.partialorder %v2100_v38, 8.507059e+37 }
 0x3e5   : > { %v2103_v21 = vor.u32 1.1754944e-38, %v2102_v31  ;;  %vm2056_vm5 = vcmp.eq.f32.partialorder %v2055_v14, 8.507059e+37 }
 0x3e6   : > { %v2058_v9 = vor.u32 1.1754944e-38, %v2057_v49 }
 0x3e7   : > { %v2383_v59 = vpop.eup %2382 }
 0x3e8   : > { %v2385_v35 = vpop.eup %2384  ;;  %v2062_v29 = vmul.f32 %v2383_v59, %v2043_v44  ;;  %vm2067_vm14 = vweird.f32 %v2383_v59 }
 0x3e9   : > { %v2387_v33 = vpop.eup %2386  ;;  %v2092_v61 = vmul.f32 %v2385_v35, %v2045_v58  ;;  %vm2097_vm8 = vweird.f32 %v2385_v35  ;;  %vm4120_vm6 = vmor %vm2066_vm9, %vm2067_vm14  ;;  %vm2114_vm9 = vcmask 1042434   ;;  %vm2120_vm14 = vcmp.lt.s32.totalorder %v4386_v0, 512 }
 0x3ea   : > { %v2047_v28 = vmul.f32 %v2387_v33, %v2042_v43  ;;  %v2063_v19 = vsub.f32 1.0, %v2062_v29  ;;  %vm2052_vm1 = vweird.f32 %v2387_v33  ;;  %vm4124_vm0 = vmor %vm2096_vm3, %vm2097_vm8  ;;  %vm4387_vm3 = vcmask 1040384  }
 0x3eb   : > { %v2093_v41 = vsub.f32 1.0, %v2092_v61  ;;  %vm4130_vm15 = vmor %vm2051_vm10, %vm2052_vm1  ;;  %vm4388_vm8 = vcmask 1041408  }
 0x3ec   : > { %v2048_v48 = vsub.f32 1.0, %v2047_v28  ;;  %v2064_v52 = vmul.f32 %v2383_v59, %v2063_v19 }
 0x3ed   : > { %v2007_v63 = vpop.f32.mrf.mxu1  ;;  %v2094_v51 = vmul.f32 %v2385_v35, %v2093_v41 }
 0x3ee   : > { %v2350_v56 = vmul.f32 -1.442695, %v2007_v63  ;;  %v2049_v32 = vmul.f32 %v2387_v33, %v2048_v48  ;;  %v2065_v37 = vadd.f32 %v2383_v59, %v2064_v52 }
 0x3ef   : > { %v2095_v7 = vadd.f32 %v2385_v35, %v2094_v51 }
 0x3f0   : > { %2388 = vpow2.f32 %v2350_v56  ;;  %v2050_v20 = vadd.f32 %v2387_v33, %v2049_v32  ;;  %v2069_v39 = vsel %vm4120_vm6, %v2383_v59, %v2065_v37 }
 0x3f1   : > { %v2099_v3 = vsel %vm4124_vm0, %v2385_v35, %v2095_v7  ;;  %v2074_v13 = vsel %vm2071_vm4, %v2073_v17, %v2069_v39 }
 0x3f2   : > { %v2054_v40 = vsel %vm4130_vm15, %v2387_v33, %v2050_v20  ;;  %v2104_v11 = vsel %vm2101_vm12, %v2103_v21, %v2099_v3  ;;  %v2110_v16 = vrot.slane %v2074_v13, 7 }
 0x3f3   : > { %v2059_v24 = vsel %vm2056_vm5, %v2058_v9, %v2054_v40  ;;  %v2112_v57 = vrot.slane %v2104_v11, 5 }
 0x3f4   : > { %v2113_v36 = vsel %vm4387_vm3, %v2059_v24, %v2110_v16 }
 0x3f6   : > { %v2389_v55 = vpop.eup %2388 }
 0x3f7   : > { %v2044_v27 = vadd.f32 1.0, %v2389_v55 }
 0x3f9   : > { %2390 = vrcp.f32 %v2044_v27  ;;  %v2087_v45 = vand.u32 2147483648, %v2044_v27  ;;  %v2085_v47 = vand.u32 2147483647, %v2044_v27  ;;  %vm2081_vm7 = vweird.f32 %v2044_v27 }
 0x3fb   : > { %v2088_v25 = vor.u32 1.1754944e-38, %v2087_v45  ;;  %vm2086_vm13 = vcmp.eq.f32.partialorder %v2085_v47, 8.507059e+37 }
 0x3ff   : > { %v2391_v30 = vpop.eup %2390 }
 0x400   : > { %v2077_v15 = vmul.f32 %v2391_v30, %v2044_v27  ;;  %vm2082_vm11 = vweird.f32 %v2391_v30 }
 0x401   : > { %vm2083_vm2 = vmor %vm2081_vm7, %vm2082_vm11 }
 0x402   : > { %v2078_v1 = vsub.f32 1.0, %v2077_v15 }
 0x404   : > { %v2079_v5 = vmul.f32 %v2391_v30, %v2078_v1 }
 0x406   : > { %v2080_v22 = vadd.f32 %v2391_v30, %v2079_v5 }
 0x408   : > { %v2084_v26 = vsel %vm2083_vm2, %v2391_v30, %v2080_v22 }
 0x409   : > { %v2089_v2 = vsel %vm2086_vm13, %v2088_v25, %v2084_v26 }
 0x40a   : > { %v2111_v10 = vrot.slane %v2089_v2, 6 }
 0x40c   : > { %v2115_v53 = vsel %vm2114_vm9, %v2111_v10, %v2112_v57 }
 0x40d   : > { %v2116_v60 = vsel %vm4388_vm8, %v2113_v36, %v2115_v53 }
 0x40e   : > { %2122 = vst.msk [vmem:[%s285_s13] sm:$0xf] %vm2120_vm14, %v2116_v60 }
 0x40f PF: > { %s18_s24 = sadd.s32 1, %s2398_s24  }
 0x410   : > { %p15_p5 = scmp.ge.s32.totalorder %s18_s24, 4  }
 0x412   :  { %17 = sbr.rel (!%p15_p5) target bundleno = 1 (0x1), region = 96 }

</bundles_post_ra>
